<compile_context>
chip_gen: v6e
topology: v6e:2x2x1
jax: 0.10.0
libtpu: 0.0.40
codegen_flags: <defaults>
</compile_context>

<pallas_src>
import functools

import jax
import jax.numpy as jnp
import numpy as np
from jax.experimental import pallas as pl
from jax.experimental.pallas import tpu as pltpu

GROUPS = 8
EPS = 1e-5   # nn.GroupNorm default


def _round_up(x, m):
    return (x + m - 1) // m * m


def _vmem_block_bytes(shape, dtype):
    """Rough padded-VMEM footprint of one buffer of `shape`/`dtype`."""
    it = jnp.dtype(dtype).itemsize
    if len(shape) == 1:
        lead, r, c = 1, 1, shape[0]
    else:
        lead = 1
        for d in shape[:-2]:
            lead *= int(d)
        r, c = shape[-2], shape[-1]
    return lead * _round_up(r, 8 * (4 // it)) * _round_up(c, 128) * it


# ---------------- fused Pallas kernel ----------------

def _fused_block_kernel(x_ref, g_ref, be_ref, sc_ref, sh_ref, pool_ref,
                        w_ref, bias_ref, o_ref, hs_ref, *, W, pad, Bb):
    """Bb batch elements: GroupNorm + FiLM + SiLU + 3x3 conv + bias + residual.

    x_ref   : [Bb, C, HW]       f32   input (also the residual)
    g_ref   : [C, 1]            f32   GroupNorm gamma
    be_ref  : [C, 1]            f32   GroupNorm beta
    sc_ref  : [Bb, C, 1]        f32   FiLM scale
    sh_ref  : [Bb, C, 1]        f32   FiLM shift
    pool_ref: [C, C]            f32   group-average matrix (1/(Cg*HW) within group)
    w_ref   : [C, 9C]           bf16  conv taps, cols [t*C,(t+1)*C) = wc[:,:,t//3,t%3]
    bias_ref: [C, 1]            f32   conv bias
    o_ref   : [Bb, C, HW]       f32   output
    hs_ref  : [9C, 2*pad + HW]  bf16  scratch: stacked shifted tap slabs
    """
    C = g_ref.shape[0]
    HW = x_ref.shape[2]
    zw = W + 1

    # Zero only the read-window strips that the shifted writes never cover
    # (they provide the top/bottom zero padding).  Unconditional: cheap, and
    # safe under megacore sharding (no reliance on program_id(0) == 0).
    hs_ref[:, pl.ds(pad, zw)] = jnp.zeros((9 * C, zw), jnp.bfloat16)
    hs_ref[:, pl.ds(pad + HW - zw, zw)] = jnp.zeros((9 * C, zw), jnp.bfloat16)

    # Column-wrap masks (batch-invariant -> hoisted out of the Bb loop).
    col = jax.lax.broadcasted_iota(jnp.int32, (C, HW), 1) % W
    keep_l = col != (W - 1)     # zeroed source column for dw == 0 (left) taps
    keep_r = col != 0           # zeroed source column for dw == 2 (right) taps

    gamma = g_ref[...]
    beta = be_ref[...]
    bias = bias_ref[...]
    pool = pool_ref[...]
    w_big = w_ref[...]

    for b in range(Bb):
        x = x_ref[b]                                         # [C, HW] f32

        # ---- GroupNorm: centered two-pass stats via tiny pooling matmuls ----
        s1 = jnp.sum(x, axis=1, keepdims=True)               # [C, 1]
        mean_c = jnp.dot(pool, s1, preferred_element_type=jnp.float32)
        xc = x - mean_c
        s2 = jnp.sum(xc * xc, axis=1, keepdims=True)         # [C, 1]
        var_c = jnp.dot(pool, s2, preferred_element_type=jnp.float32)
        rstd_c = jax.lax.rsqrt(var_c + EPS)

        y = xc * rstd_c * gamma + beta                       # GroupNorm affine
        y = y * (1.0 + sc_ref[b]) + sh_ref[b]                # FiLM: x*(1+scale)+shift
        h = y * jax.nn.sigmoid(y)                            # SiLU

        # ---- pre-masked bf16 variants (replaces 6 per-tap selects) ----
        h_c = h.astype(jnp.bfloat16)
        h_l = jnp.where(keep_l, h, 0.0).astype(jnp.bfloat16)
        h_r = jnp.where(keep_r, h, 0.0).astype(jnp.bfloat16)

        # ---- scatter the 9 shifted tap slabs into the stacked operand ----
        for dh in range(3):
            for dw in range(3):
                t = dh * 3 + dw
                d = (dh - 1) * W + (dw - 1)                  # static lane offset
                src = h_l if dw == 0 else (h_r if dw == 2 else h_c)
                hs_ref[pl.ds(t * C, C), pl.ds(pad - d, HW)] = src

        # ---- single K=9C bf16 MXU matmul, f32 accumulation ----
        stacked = hs_ref[:, pl.ds(pad, HW)]                  # [9C, HW] bf16
        conv = jnp.dot(w_big, stacked, preferred_element_type=jnp.float32)

        o_ref[b] = conv + bias + x_ref[b]                    # conv bias + residual


# ---------------- wrapper ----------------

def cross_attention_block(x, cond, params):
    B, C, H, W = x.shape
    G = GROUPS
    assert C % G == 0
    Cg = C // G
    HW = H * W
    pad = _round_up(W + 1, 128)          # lane-aligned guard, >= W + 1

    # batch elements per grid step (divisor of B)
    Bb = 1
    for cand in (4, 2):
        if B % cand == 0:
            Bb = cand
            break

    # ---- condition projection (tiny Linear + SiLU): plain XLA, no extra launch ----
    if cond is None or cond.size == 0:
        # PyTorch fallback branch: no conditioning => scale = shift = 0
        scale = jnp.zeros((B, C), jnp.float32)
        shift = jnp.zeros((B, C), jnp.float32)
    else:
        cp = cond.astype(jnp.float32) @ params["w1"] + params["b1"]
        cp = cp * jax.nn.sigmoid(cp)
        scale, shift = cp[:, :C], cp[:, C:]                  # chunk(2, dim=1)

    x_flat = x.reshape(B, C, HW).astype(jnp.float32)
    gamma2 = params["gamma"].reshape(C, 1).astype(jnp.float32)
    beta2 = params["beta"].reshape(C, 1).astype(jnp.float32)
    scale3 = scale.reshape(B, C, 1)
    shift3 = shift.reshape(B, C, 1)

    gid = jnp.arange(C, dtype=jnp.int32) // Cg
    pool = (gid[:, None] == gid[None, :]).astype(jnp.float32) / float(Cg * HW)

    # conv taps reshaped so tap t = kh*3+kw occupies columns [t*C, (t+1)*C)
    w_big = params["wc"].transpose(0, 2, 3, 1).reshape(C, 9 * C).astype(jnp.bfloat16)
    bias2 = params["bc"].reshape(C, 1).astype(jnp.float32)

    kernel = functools.partial(_fused_block_kernel, W=W, pad=pad, Bb=Bb)

    # explicit scoped-VMEM budget from the per-step footprint (double-buffered I/O)
    io_block = _vmem_block_bytes((Bb, C, HW), jnp.float32)
    fp = (2 * 2 * io_block                                   # x in + out, 2 buffers each
          + 2 * (_vmem_block_bytes((C, 9 * C), jnp.bfloat16)
                 + _vmem_block_bytes((C, C), jnp.float32)
                 + 3 * _vmem_block_bytes((C, 1), jnp.float32)
                 + 2 * _vmem_block_bytes((Bb, C, 1), jnp.float32))
          + _vmem_block_bytes((9 * C, 2 * pad + HW), jnp.bfloat16))
    vmem_limit = int(min(max(2 * fp + (4 << 20), 32 << 20), 64 << 20))

    out = pl.pallas_call(
        kernel,
        out_shape=jax.ShapeDtypeStruct((B, C, HW), jnp.float32),
        grid=(B // Bb,),
        in_specs=[
            pl.BlockSpec((Bb, C, HW), lambda i: (i, 0, 0)),  # x / residual
            pl.BlockSpec((C, 1), lambda i: (0, 0)),          # GN gamma
            pl.BlockSpec((C, 1), lambda i: (0, 0)),          # GN beta
            pl.BlockSpec((Bb, C, 1), lambda i: (i, 0, 0)),   # FiLM scale
            pl.BlockSpec((Bb, C, 1), lambda i: (i, 0, 0)),   # FiLM shift
            pl.BlockSpec((C, C), lambda i: (0, 0)),          # group pooling matrix
            pl.BlockSpec((C, 9 * C), lambda i: (0, 0)),      # fused conv taps (bf16)
            pl.BlockSpec((C, 1), lambda i: (0, 0)),          # conv bias
        ],
        out_specs=pl.BlockSpec((Bb, C, HW), lambda i: (i, 0, 0)),
        scratch_shapes=[pltpu.VMEM((9 * C, 2 * pad + HW), jnp.bfloat16)],
        compiler_params=pltpu.CompilerParams(
            dimension_semantics=("parallel",),
            vmem_limit_bytes=vmem_limit),
    )(x_flat, gamma2, beta2, scale3, shift3, pool, w_big, bias2)

    return out.reshape(B, C, H, W)


# ---------------- pure-JAX reference ----------------

def reference(x, cond, params):
    B, C, H, W = x.shape
    G = GROUPS
    xg = x.reshape(B, G, -1)
    mean = xg.mean(axis=-1, keepdims=True)
    var = ((xg - mean) ** 2).mean(axis=-1, keepdims=True)
    xn = ((xg - mean) / jnp.sqrt(var + EPS)).reshape(B, C, H, W)
    xn = xn * params["gamma"][None, :, None, None] + params["beta"][None, :, None, None]
    cp = cond @ params["w1"] + params["b1"]
    cp = cp * jax.nn.sigmoid(cp)
    scale, shift = cp[:, :C], cp[:, C:]
    y = xn * (1.0 + scale[:, :, None, None]) + shift[:, :, None, None]
    y = y * jax.nn.sigmoid(y)
    y = jax.lax.conv_general_dilated(
        y, params["wc"], (1, 1), ((1, 1), (1, 1)),
        dimension_numbers=("NCHW", "OIHW", "NCHW"))
    y = y + params["bc"][None, :, None, None]
    return y + x


if __name__ == "__main__":
    B, C, H, W = 2, 16, 16, 16     # channels must be divisible by 8 (GroupNorm groups)
    D = 32                          # condition_dim
    key = jax.random.PRNGKey(0)
    ks = jax.random.split(key, 8)
    x = jax.random.normal(ks[0], (B, C, H, W), jnp.float32)
    cond = jax.random.normal(ks[1], (B, D), jnp.float32)
    params = dict(
        w1=0.1 * jax.random.normal(ks[2], (D, 2 * C), jnp.float32),     # Linear (in, out)
        b1=0.1 * jax.random.normal(ks[3], (2 * C,), jnp.float32),
        gamma=1.0 + 0.1 * jax.random.normal(ks[4], (C,), jnp.float32),  # GroupNorm weight
        beta=0.1 * jax.random.normal(ks[5], (C,), jnp.float32),         # GroupNorm bias
        wc=0.1 * jax.random.normal(ks[6], (C, C, 3, 3), jnp.float32),   # Conv2d OIHW
        bc=0.1 * jax.random.normal(ks[7], (C,), jnp.float32),
    )

    out = jax.jit(cross_attention_block)(x, cond, params)
    out = jax.block_until_ready(out)

    ref = reference(x, cond, params)
    np.testing.assert_allclose(np.asarray(out), np.asarray(ref), rtol=2e-2, atol=2e-2)
    print("KERNEL_OK")
</pallas_src>

<mosaic_0001>
module attributes {stable_mosaic.version = 11 : i64} {
  func.func @_fused_block_kernel(%arg0: i32, %arg1: memref<2x16x256xf32, #tpu.memory_space<vmem>>, %arg2: memref<16x1xf32, #tpu.memory_space<vmem>>, %arg3: memref<16x1xf32, #tpu.memory_space<vmem>>, %arg4: memref<2x16x1xf32, #tpu.memory_space<vmem>>, %arg5: memref<2x16x1xf32, #tpu.memory_space<vmem>>, %arg6: memref<16x16xf32, #tpu.memory_space<vmem>>, %arg7: memref<16x144xbf16, #tpu.memory_space<vmem>>, %arg8: memref<16x1xf32, #tpu.memory_space<vmem>>, %arg9: memref<2x16x256xf32, #tpu.memory_space<vmem>>, %arg10: memref<144x512xbf16, #tpu.memory_space<vmem>>) attributes {dimension_semantics = [#tpu.dimension_semantics<parallel>], iteration_bounds = array<i64: 1>, scalar_prefetch = 0 : i64, scratch_operands = 1 : i64, tpu.core_type = #tpu.core_type<tc>, window_params = [{transform_indices = @transform_0, window_bounds = array<i64: 2, 16, 256>}, {pipeline_mode = #tpu.pipeline_mode<synchronous>, transform_indices = @transform_1, window_bounds = array<i64: 16, 1>}, {pipeline_mode = #tpu.pipeline_mode<synchronous>, transform_indices = @transform_2, window_bounds = array<i64: 16, 1>}, {transform_indices = @transform_3, window_bounds = array<i64: 2, 16, 1>}, {transform_indices = @transform_4, window_bounds = array<i64: 2, 16, 1>}, {pipeline_mode = #tpu.pipeline_mode<synchronous>, transform_indices = @transform_5, window_bounds = array<i64: 16, 16>}, {pipeline_mode = #tpu.pipeline_mode<synchronous>, transform_indices = @transform_6, window_bounds = array<i64: 16, 144>}, {pipeline_mode = #tpu.pipeline_mode<synchronous>, transform_indices = @transform_7, window_bounds = array<i64: 16, 1>}, {transform_indices = @transform_8, window_bounds = array<i64: 2, 16, 256>}]} {
    %cst = arith.constant 0.000000e+00 : bf16
    %0 = vector.broadcast %cst : bf16 to vector<144x17xbf16>
    %c0 = arith.constant 0 : index
    %c128 = arith.constant 128 : index
    %1 = vector.load %arg10[%c0, %c128] : memref<144x512xbf16, #tpu.memory_space<vmem>>, vector<144x17xbf16>
    tpu.vector_store %arg10[%c0, %c128], %0 {strides = array<i32>} : memref<144x512xbf16, #tpu.memory_space<vmem>>, vector<144x17xbf16>,
    %cst_0 = arith.constant 0.000000e+00 : bf16
    %2 = vector.broadcast %cst_0 : bf16 to vector<144x17xbf16>
    %c0_1 = arith.constant 0 : index
    %c367 = arith.constant 367 : index
    %3 = vector.load %arg10[%c0_1, %c367] : memref<144x512xbf16, #tpu.memory_space<vmem>>, vector<144x17xbf16>
    tpu.vector_store %arg10[%c0_1, %c367], %2 {strides = array<i32>} : memref<144x512xbf16, #tpu.memory_space<vmem>>, vector<144x17xbf16>,
    %4 = tpu.iota {dimensions = array<i32: 1>} : vector<16x256xi32>
    %c16_i32 = arith.constant 16 : i32
    %c0_i32 = arith.constant 0 : i32
    %5 = arith.cmpi eq, %c16_i32, %c0_i32 : i32
    %c1_i32 = arith.constant 1 : i32
    %6 = arith.select %5, %c1_i32, %c16_i32 : i32
    %7 = vector.broadcast %6 : i32 to vector<16x256xi32>
    %8 = arith.remsi %4, %7 : vector<16x256xi32>
    %c0_i32_2 = arith.constant 0 : i32
    %9 = vector.broadcast %c0_i32_2 : i32 to vector<16x256xi32>
    %10 = arith.cmpi ne, %8, %9 : vector<16x256xi32>
    %c0_i32_3 = arith.constant 0 : i32
    %11 = vector.broadcast %c0_i32_3 : i32 to vector<16x256xi32>
    %12 = arith.cmpi slt, %8, %11 : vector<16x256xi32>
    %c0_i32_4 = arith.constant 0 : i32
    %13 = arith.cmpi slt, %6, %c0_i32_4 : i32
    %14 = vector.broadcast %13 : i1 to vector<16x256xi1>
    %15 = vector.broadcast %14 : vector<16x256xi1> to vector<16x256xi1>
    %16 = arith.xori %12, %15 : vector<16x256xi1>
    %17 = arith.andi %16, %10 : vector<16x256xi1>
    %18 = vector.broadcast %6 : i32 to vector<16x256xi32>
    %19 = arith.addi %8, %18 : vector<16x256xi32>
    %20 = arith.select %17, %19, %8 : vector<16x256xi1>, vector<16x256xi32>
    %c15_i32 = arith.constant 15 : i32
    %21 = vector.broadcast %c15_i32 : i32 to vector<16x256xi32>
    %22 = arith.cmpi ne, %20, %21 : vector<16x256xi32>
    %c0_i32_5 = arith.constant 0 : i32
    %23 = vector.broadcast %c0_i32_5 : i32 to vector<16x256xi32>
    %24 = arith.cmpi ne, %20, %23 : vector<16x256xi32>
    %c0_6 = arith.constant 0 : index
    %c0_7 = arith.constant 0 : index
    %25 = vector.load %arg2[%c0_6, %c0_7] : memref<16x1xf32, #tpu.memory_space<vmem>>, vector<16x1xf32>
    %c0_8 = arith.constant 0 : index
    %c0_9 = arith.constant 0 : index
    %26 = vector.load %arg3[%c0_8, %c0_9] : memref<16x1xf32, #tpu.memory_space<vmem>>, vector<16x1xf32>
    %c0_10 = arith.constant 0 : index
    %c0_11 = arith.constant 0 : index
    %27 = vector.load %arg8[%c0_10, %c0_11] : memref<16x1xf32, #tpu.memory_space<vmem>>, vector<16x1xf32>
    %c0_12 = arith.constant 0 : index
    %c0_13 = arith.constant 0 : index
    %28 = vector.load %arg6[%c0_12, %c0_13] : memref<16x16xf32, #tpu.memory_space<vmem>>, vector<16x16xf32>
    %c0_14 = arith.constant 0 : index
    %c0_15 = arith.constant 0 : index
    %29 = vector.load %arg7[%c0_14, %c0_15] : memref<16x144xbf16, #tpu.memory_space<vmem>>, vector<16x144xbf16>
    %c0_16 = arith.constant 0 : index
    %c0_17 = arith.constant 0 : index
    %c0_18 = arith.constant 0 : index
    %30 = vector.load %arg1[%c0_16, %c0_17, %c0_18] : memref<2x16x256xf32, #tpu.memory_space<vmem>>, vector<1x16x256xf32>
    %31 = vector.shape_cast %30 : vector<1x16x256xf32> to vector<16x256xf32>
    %cst_19 = arith.constant dense<0.000000e+00> : vector<16xf32>
    %32 = vector.multi_reduction <add>, %31, %cst_19 [1] : vector<16x256xf32> to vector<16xf32>
    %33 = vector.shape_cast %32 : vector<16xf32> to vector<16x1xf32>
    %cst_20 = arith.constant dense<0.000000e+00> : vector<16x1xf32>
    %34 = tpu.matmul %28, %33, %cst_20 {dimension_numbers = #tpu.dot_dimension_numbers<[1], [0], [0], [1], [0, 0, 1, 1], [], []>} : vector<16x16xf32>, vector<16x1xf32>, vector<16x1xf32> -> vector<16x1xf32>
    %35 = vector.broadcast %34 : vector<16x1xf32> to vector<16x256xf32>
    %36 = arith.subf %31, %35 : vector<16x256xf32>
    %37 = arith.mulf %36, %36 : vector<16x256xf32>
    %cst_21 = arith.constant dense<0.000000e+00> : vector<16xf32>
    %38 = vector.multi_reduction <add>, %37, %cst_21 [1] : vector<16x256xf32> to vector<16xf32>
    %39 = vector.shape_cast %38 : vector<16xf32> to vector<16x1xf32>
    %cst_22 = arith.constant dense<0.000000e+00> : vector<16x1xf32>
    %40 = tpu.matmul %28, %39, %cst_22 {dimension_numbers = #tpu.dot_dimension_numbers<[1], [0], [0], [1], [0, 0, 1, 1], [], []>} : vector<16x16xf32>, vector<16x1xf32>, vector<16x1xf32> -> vector<16x1xf32>
    %cst_23 = arith.constant 9.99999974E-6 : f32
    %41 = vector.broadcast %cst_23 : f32 to vector<16x1xf32>
    %42 = arith.addf %40, %41 : vector<16x1xf32>
    %43 = math.rsqrt %42 : vector<16x1xf32>
    %44 = vector.broadcast %43 : vector<16x1xf32> to vector<16x256xf32>
    %45 = arith.mulf %36, %44 : vector<16x256xf32>
    %46 = vector.broadcast %25 : vector<16x1xf32> to vector<16x256xf32>
    %47 = arith.mulf %45, %46 : vector<16x256xf32>
    %48 = vector.broadcast %26 : vector<16x1xf32> to vector<16x256xf32>
    %49 = arith.addf %47, %48 : vector<16x256xf32>
    %c0_24 = arith.constant 0 : index
    %c0_25 = arith.constant 0 : index
    %c0_26 = arith.constant 0 : index
    %50 = vector.load %arg4[%c0_24, %c0_25, %c0_26] : memref<2x16x1xf32, #tpu.memory_space<vmem>>, vector<1x16x1xf32>
    %51 = vector.shape_cast %50 : vector<1x16x1xf32> to vector<16x1xf32>
    %cst_27 = arith.constant 1.000000e+00 : f32
    %52 = vector.broadcast %cst_27 : f32 to vector<16x1xf32>
    %53 = arith.addf %52, %51 : vector<16x1xf32>
    %54 = vector.broadcast %53 : vector<16x1xf32> to vector<16x256xf32>
    %55 = arith.mulf %49, %54 : vector<16x256xf32>
    %c0_28 = arith.constant 0 : index
    %c0_29 = arith.constant 0 : index
    %c0_30 = arith.constant 0 : index
    %56 = vector.load %arg5[%c0_28, %c0_29, %c0_30] : memref<2x16x1xf32, #tpu.memory_space<vmem>>, vector<1x16x1xf32>
    %57 = vector.shape_cast %56 : vector<1x16x1xf32> to vector<16x1xf32>
    %58 = vector.broadcast %57 : vector<16x1xf32> to vector<16x256xf32>
    %59 = arith.addf %55, %58 : vector<16x256xf32>
    %60 = arith.negf %59 : vector<16x256xf32>
    %61 = math.exp %60 : vector<16x256xf32>
    %cst_31 = arith.constant 1.000000e+00 : f32
    %62 = vector.broadcast %cst_31 : f32 to vector<16x256xf32>
    %63 = arith.addf %62, %61 : vector<16x256xf32>
    %64 = arith.divf %62, %63 : vector<16x256xf32>
    %65 = arith.mulf %59, %64 : vector<16x256xf32>
    %66 = arith.truncf %65 : vector<16x256xf32> to vector<16x256xbf16>
    %cst_32 = arith.constant 0.000000e+00 : f32
    %67 = vector.broadcast %cst_32 : f32 to vector<16x256xf32>
    %68 = arith.select %22, %65, %67 : vector<16x256xi1>, vector<16x256xf32>
    %69 = arith.truncf %68 : vector<16x256xf32> to vector<16x256xbf16>
    %cst_33 = arith.constant 0.000000e+00 : f32
    %70 = vector.broadcast %cst_33 : f32 to vector<16x256xf32>
    %71 = arith.select %24, %65, %70 : vector<16x256xi1>, vector<16x256xf32>
    %72 = arith.truncf %71 : vector<16x256xf32> to vector<16x256xbf16>
    %c0_34 = arith.constant 0 : index
    %c145 = arith.constant 145 : index
    %73 = vector.load %arg10[%c0_34, %c145] : memref<144x512xbf16, #tpu.memory_space<vmem>>, vector<16x256xbf16>
    tpu.vector_store %arg10[%c0_34, %c145], %69 {strides = array<i32>} : memref<144x512xbf16, #tpu.memory_space<vmem>>, vector<16x256xbf16>,
    %c16 = arith.constant 16 : index
    %c144 = arith.constant 144 : index
    %74 = vector.load %arg10[%c16, %c144] : memref<144x512xbf16, #tpu.memory_space<vmem>>, vector<16x256xbf16>
    tpu.vector_store %arg10[%c16, %c144], %66 {strides = array<i32>} : memref<144x512xbf16, #tpu.memory_space<vmem>>, vector<16x256xbf16>,
    %c32 = arith.constant 32 : index
    %c143 = arith.constant 143 : index
    %75 = vector.load %arg10[%c32, %c143] : memref<144x512xbf16, #tpu.memory_space<vmem>>, vector<16x256xbf16>
    tpu.vector_store %arg10[%c32, %c143], %72 {strides = array<i32>} : memref<144x512xbf16, #tpu.memory_space<vmem>>, vector<16x256xbf16>,
    %c48 = arith.constant 48 : index
    %c129 = arith.constant 129 : index
    %76 = vector.load %arg10[%c48, %c129] : memref<144x512xbf16, #tpu.memory_space<vmem>>, vector<16x256xbf16>
    tpu.vector_store %arg10[%c48, %c129], %69 {strides = array<i32>} : memref<144x512xbf16, #tpu.memory_space<vmem>>, vector<16x256xbf16>,
    %c64 = arith.constant 64 : index
    %c128_35 = arith.constant 128 : index
    %77 = vector.load %arg10[%c64, %c128_35] : memref<144x512xbf16, #tpu.memory_space<vmem>>, vector<16x256xbf16>
    tpu.vector_store %arg10[%c64, %c128_35], %66 {strides = array<i32>} : memref<144x512xbf16, #tpu.memory_space<vmem>>, vector<16x256xbf16>,
    %c80 = arith.constant 80 : index
    %c127 = arith.constant 127 : index
    %78 = vector.load %arg10[%c80, %c127] : memref<144x512xbf16, #tpu.memory_space<vmem>>, vector<16x256xbf16>
    tpu.vector_store %arg10[%c80, %c127], %72 {strides = array<i32>} : memref<144x512xbf16, #tpu.memory_space<vmem>>, vector<16x256xbf16>,
    %c96 = arith.constant 96 : index
    %c113 = arith.constant 113 : index
    %79 = vector.load %arg10[%c96, %c113] : memref<144x512xbf16, #tpu.memory_space<vmem>>, vector<16x256xbf16>
    tpu.vector_store %arg10[%c96, %c113], %69 {strides = array<i32>} : memref<144x512xbf16, #tpu.memory_space<vmem>>, vector<16x256xbf16>,
    %c112 = arith.constant 112 : index
    %c112_36 = arith.constant 112 : index
    %80 = vector.load %arg10[%c112, %c112_36] : memref<144x512xbf16, #tpu.memory_space<vmem>>, vector<16x256xbf16>
    tpu.vector_store %arg10[%c112, %c112_36], %66 {strides = array<i32>} : memref<144x512xbf16, #tpu.memory_space<vmem>>, vector<16x256xbf16>,
    %c128_37 = arith.constant 128 : index
    %c111 = arith.constant 111 : index
    %81 = vector.load %arg10[%c128_37, %c111] : memref<144x512xbf16, #tpu.memory_space<vmem>>, vector<16x256xbf16>
    tpu.vector_store %arg10[%c128_37, %c111], %72 {strides = array<i32>} : memref<144x512xbf16, #tpu.memory_space<vmem>>, vector<16x256xbf16>,
    %c0_38 = arith.constant 0 : index
    %c128_39 = arith.constant 128 : index
    %82 = vector.load %arg10[%c0_38, %c128_39] : memref<144x512xbf16, #tpu.memory_space<vmem>>, vector<144x256xbf16>
    %cst_40 = arith.constant dense<0.000000e+00> : vector<16x256xf32>
    %83 = tpu.matmul %29, %82, %cst_40 {dimension_numbers = #tpu.dot_dimension_numbers<[1], [0], [0], [1], [0, 0, 1, 1], [], []>} : vector<16x144xbf16>, vector<144x256xbf16>, vector<16x256xf32> -> vector<16x256xf32>
    %84 = vector.broadcast %27 : vector<16x1xf32> to vector<16x256xf32>
    %85 = arith.addf %83, %84 : vector<16x256xf32>
    %c0_41 = arith.constant 0 : index
    %c0_42 = arith.constant 0 : index
    %c0_43 = arith.constant 0 : index
    %86 = vector.load %arg1[%c0_41, %c0_42, %c0_43] : memref<2x16x256xf32, #tpu.memory_space<vmem>>, vector<1x16x256xf32>
    %87 = vector.shape_cast %86 : vector<1x16x256xf32> to vector<16x256xf32>
    %88 = arith.addf %85, %87 : vector<16x256xf32>
    %c0_44 = arith.constant 0 : index
    %c0_45 = arith.constant 0 : index
    %c0_46 = arith.constant 0 : index
    %89 = vector.load %arg9[%c0_44, %c0_45, %c0_46] : memref<2x16x256xf32, #tpu.memory_space<vmem>>, vector<1x16x256xf32>
    %90 = vector.shape_cast %89 : vector<1x16x256xf32> to vector<16x256xf32>
    %91 = vector.shape_cast %88 : vector<16x256xf32> to vector<1x16x256xf32>
    tpu.vector_store %arg9[%c0_44, %c0_45, %c0_46], %91 {strides = array<i32>} : memref<2x16x256xf32, #tpu.memory_space<vmem>>, vector<1x16x256xf32>,
    %c1 = arith.constant 1 : index
    %c0_47 = arith.constant 0 : index
    %c0_48 = arith.constant 0 : index
    %92 = vector.load %arg1[%c1, %c0_47, %c0_48] : memref<2x16x256xf32, #tpu.memory_space<vmem>>, vector<1x16x256xf32>
    %93 = vector.shape_cast %92 : vector<1x16x256xf32> to vector<16x256xf32>
    %cst_49 = arith.constant dense<0.000000e+00> : vector<16xf32>
    %94 = vector.multi_reduction <add>, %93, %cst_49 [1] : vector<16x256xf32> to vector<16xf32>
    %95 = vector.shape_cast %94 : vector<16xf32> to vector<16x1xf32>
    %cst_50 = arith.constant dense<0.000000e+00> : vector<16x1xf32>
    %96 = tpu.matmul %28, %95, %cst_50 {dimension_numbers = #tpu.dot_dimension_numbers<[1], [0], [0], [1], [0, 0, 1, 1], [], []>} : vector<16x16xf32>, vector<16x1xf32>, vector<16x1xf32> -> vector<16x1xf32>
    %97 = vector.broadcast %96 : vector<16x1xf32> to vector<16x256xf32>
    %98 = arith.subf %93, %97 : vector<16x256xf32>
    %99 = arith.mulf %98, %98 : vector<16x256xf32>
    %cst_51 = arith.constant dense<0.000000e+00> : vector<16xf32>
    %100 = vector.multi_reduction <add>, %99, %cst_51 [1] : vector<16x256xf32> to vector<16xf32>
    %101 = vector.shape_cast %100 : vector<16xf32> to vector<16x1xf32>
    %cst_52 = arith.constant dense<0.000000e+00> : vector<16x1xf32>
    %102 = tpu.matmul %28, %101, %cst_52 {dimension_numbers = #tpu.dot_dimension_numbers<[1], [0], [0], [1], [0, 0, 1, 1], [], []>} : vector<16x16xf32>, vector<16x1xf32>, vector<16x1xf32> -> vector<16x1xf32>
    %cst_53 = arith.constant 9.99999974E-6 : f32
    %103 = vector.broadcast %cst_53 : f32 to vector<16x1xf32>
    %104 = arith.addf %102, %103 : vector<16x1xf32>
    %105 = math.rsqrt %104 : vector<16x1xf32>
    %106 = vector.broadcast %105 : vector<16x1xf32> to vector<16x256xf32>
    %107 = arith.mulf %98, %106 : vector<16x256xf32>
    %108 = vector.broadcast %25 : vector<16x1xf32> to vector<16x256xf32>
    %109 = arith.mulf %107, %108 : vector<16x256xf32>
    %110 = vector.broadcast %26 : vector<16x1xf32> to vector<16x256xf32>
    %111 = arith.addf %109, %110 : vector<16x256xf32>
    %c1_54 = arith.constant 1 : index
    %c0_55 = arith.constant 0 : index
    %c0_56 = arith.constant 0 : index
    %112 = vector.load %arg4[%c1_54, %c0_55, %c0_56] : memref<2x16x1xf32, #tpu.memory_space<vmem>>, vector<1x16x1xf32>
    %113 = vector.shape_cast %112 : vector<1x16x1xf32> to vector<16x1xf32>
    %cst_57 = arith.constant 1.000000e+00 : f32
    %114 = vector.broadcast %cst_57 : f32 to vector<16x1xf32>
    %115 = arith.addf %114, %113 : vector<16x1xf32>
    %116 = vector.broadcast %115 : vector<16x1xf32> to vector<16x256xf32>
    %117 = arith.mulf %111, %116 : vector<16x256xf32>
    %c1_58 = arith.constant 1 : index
    %c0_59 = arith.constant 0 : index
    %c0_60 = arith.constant 0 : index
    %118 = vector.load %arg5[%c1_58, %c0_59, %c0_60] : memref<2x16x1xf32, #tpu.memory_space<vmem>>, vector<1x16x1xf32>
    %119 = vector.shape_cast %118 : vector<1x16x1xf32> to vector<16x1xf32>
    %120 = vector.broadcast %119 : vector<16x1xf32> to vector<16x256xf32>
    %121 = arith.addf %117, %120 : vector<16x256xf32>
    %122 = arith.negf %121 : vector<16x256xf32>
    %123 = math.exp %122 : vector<16x256xf32>
    %cst_61 = arith.constant 1.000000e+00 : f32
    %124 = vector.broadcast %cst_61 : f32 to vector<16x256xf32>
    %125 = arith.addf %124, %123 : vector<16x256xf32>
    %126 = arith.divf %124, %125 : vector<16x256xf32>
    %127 = arith.mulf %121, %126 : vector<16x256xf32>
    %128 = arith.truncf %127 : vector<16x256xf32> to vector<16x256xbf16>
    %cst_62 = arith.constant 0.000000e+00 : f32
    %129 = vector.broadcast %cst_62 : f32 to vector<16x256xf32>
    %130 = arith.select %22, %127, %129 : vector<16x256xi1>, vector<16x256xf32>
    %131 = arith.truncf %130 : vector<16x256xf32> to vector<16x256xbf16>
    %cst_63 = arith.constant 0.000000e+00 : f32
    %132 = vector.broadcast %cst_63 : f32 to vector<16x256xf32>
    %133 = arith.select %24, %127, %132 : vector<16x256xi1>, vector<16x256xf32>
    %134 = arith.truncf %133 : vector<16x256xf32> to vector<16x256xbf16>
    %c0_64 = arith.constant 0 : index
    %c145_65 = arith.constant 145 : index
    %135 = vector.load %arg10[%c0_64, %c145_65] : memref<144x512xbf16, #tpu.memory_space<vmem>>, vector<16x256xbf16>
    tpu.vector_store %arg10[%c0_64, %c145_65], %131 {strides = array<i32>} : memref<144x512xbf16, #tpu.memory_space<vmem>>, vector<16x256xbf16>,
    %c16_66 = arith.constant 16 : index
    %c144_67 = arith.constant 144 : index
    %136 = vector.load %arg10[%c16_66, %c144_67] : memref<144x512xbf16, #tpu.memory_space<vmem>>, vector<16x256xbf16>
    tpu.vector_store %arg10[%c16_66, %c144_67], %128 {strides = array<i32>} : memref<144x512xbf16, #tpu.memory_space<vmem>>, vector<16x256xbf16>,
    %c32_68 = arith.constant 32 : index
    %c143_69 = arith.constant 143 : index
    %137 = vector.load %arg10[%c32_68, %c143_69] : memref<144x512xbf16, #tpu.memory_space<vmem>>, vector<16x256xbf16>
    tpu.vector_store %arg10[%c32_68, %c143_69], %134 {strides = array<i32>} : memref<144x512xbf16, #tpu.memory_space<vmem>>, vector<16x256xbf16>,
    %c48_70 = arith.constant 48 : index
    %c129_71 = arith.constant 129 : index
    %138 = vector.load %arg10[%c48_70, %c129_71] : memref<144x512xbf16, #tpu.memory_space<vmem>>, vector<16x256xbf16>
    tpu.vector_store %arg10[%c48_70, %c129_71], %131 {strides = array<i32>} : memref<144x512xbf16, #tpu.memory_space<vmem>>, vector<16x256xbf16>,
    %c64_72 = arith.constant 64 : index
    %c128_73 = arith.constant 128 : index
    %139 = vector.load %arg10[%c64_72, %c128_73] : memref<144x512xbf16, #tpu.memory_space<vmem>>, vector<16x256xbf16>
    tpu.vector_store %arg10[%c64_72, %c128_73], %128 {strides = array<i32>} : memref<144x512xbf16, #tpu.memory_space<vmem>>, vector<16x256xbf16>,
    %c80_74 = arith.constant 80 : index
    %c127_75 = arith.constant 127 : index
    %140 = vector.load %arg10[%c80_74, %c127_75] : memref<144x512xbf16, #tpu.memory_space<vmem>>, vector<16x256xbf16>
    tpu.vector_store %arg10[%c80_74, %c127_75], %134 {strides = array<i32>} : memref<144x512xbf16, #tpu.memory_space<vmem>>, vector<16x256xbf16>,
    %c96_76 = arith.constant 96 : index
    %c113_77 = arith.constant 113 : index
    %141 = vector.load %arg10[%c96_76, %c113_77] : memref<144x512xbf16, #tpu.memory_space<vmem>>, vector<16x256xbf16>
    tpu.vector_store %arg10[%c96_76, %c113_77], %131 {strides = array<i32>} : memref<144x512xbf16, #tpu.memory_space<vmem>>, vector<16x256xbf16>,
    %c112_78 = arith.constant 112 : index
    %c112_79 = arith.constant 112 : index
    %142 = vector.load %arg10[%c112_78, %c112_79] : memref<144x512xbf16, #tpu.memory_space<vmem>>, vector<16x256xbf16>
    tpu.vector_store %arg10[%c112_78, %c112_79], %128 {strides = array<i32>} : memref<144x512xbf16, #tpu.memory_space<vmem>>, vector<16x256xbf16>,
    %c128_80 = arith.constant 128 : index
    %c111_81 = arith.constant 111 : index
    %143 = vector.load %arg10[%c128_80, %c111_81] : memref<144x512xbf16, #tpu.memory_space<vmem>>, vector<16x256xbf16>
    tpu.vector_store %arg10[%c128_80, %c111_81], %134 {strides = array<i32>} : memref<144x512xbf16, #tpu.memory_space<vmem>>, vector<16x256xbf16>,
    %c0_82 = arith.constant 0 : index
    %c128_83 = arith.constant 128 : index
    %144 = vector.load %arg10[%c0_82, %c128_83] : memref<144x512xbf16, #tpu.memory_space<vmem>>, vector<144x256xbf16>
    %cst_84 = arith.constant dense<0.000000e+00> : vector<16x256xf32>
    %145 = tpu.matmul %29, %144, %cst_84 {dimension_numbers = #tpu.dot_dimension_numbers<[1], [0], [0], [1], [0, 0, 1, 1], [], []>} : vector<16x144xbf16>, vector<144x256xbf16>, vector<16x256xf32> -> vector<16x256xf32>
    %146 = vector.broadcast %27 : vector<16x1xf32> to vector<16x256xf32>
    %147 = arith.addf %145, %146 : vector<16x256xf32>
    %c1_85 = arith.constant 1 : index
    %c0_86 = arith.constant 0 : index
    %c0_87 = arith.constant 0 : index
    %148 = vector.load %arg1[%c1_85, %c0_86, %c0_87] : memref<2x16x256xf32, #tpu.memory_space<vmem>>, vector<1x16x256xf32>
    %149 = vector.shape_cast %148 : vector<1x16x256xf32> to vector<16x256xf32>
    %150 = arith.addf %147, %149 : vector<16x256xf32>
    %c1_88 = arith.constant 1 : index
    %c0_89 = arith.constant 0 : index
    %c0_90 = arith.constant 0 : index
    %151 = vector.load %arg9[%c1_88, %c0_89, %c0_90] : memref<2x16x256xf32, #tpu.memory_space<vmem>>, vector<1x16x256xf32>
    %152 = vector.shape_cast %151 : vector<1x16x256xf32> to vector<16x256xf32>
    %153 = vector.shape_cast %150 : vector<16x256xf32> to vector<1x16x256xf32>
    tpu.vector_store %arg9[%c1_88, %c0_89, %c0_90], %153 {strides = array<i32>} : memref<2x16x256xf32, #tpu.memory_space<vmem>>, vector<1x16x256xf32>,
    return
  }
  func.func @transform_0(%arg0: i32) -> (i32, i32, i32) {
    %c0_i32 = arith.constant 0 : i32
    %c0_i32_0 = arith.constant 0 : i32
    %c0_i32_1 = arith.constant 0 : i32
    return %arg0, %c0_i32, %c0_i32_0 : i32, i32, i32
  }
  func.func @transform_1(%arg0: i32) -> (i32, i32) {
    %c0_i32 = arith.constant 0 : i32
    %c0_i32_0 = arith.constant 0 : i32
    %c0_i32_1 = arith.constant 0 : i32
    return %c0_i32, %c0_i32_0 : i32, i32
  }
  func.func @transform_2(%arg0: i32) -> (i32, i32) {
    %c0_i32 = arith.constant 0 : i32
    %c0_i32_0 = arith.constant 0 : i32
    %c0_i32_1 = arith.constant 0 : i32
    return %c0_i32, %c0_i32_0 : i32, i32
  }
  func.func @transform_3(%arg0: i32) -> (i32, i32, i32) {
    %c0_i32 = arith.constant 0 : i32
    %c0_i32_0 = arith.constant 0 : i32
    %c0_i32_1 = arith.constant 0 : i32
    return %arg0, %c0_i32, %c0_i32_0 : i32, i32, i32
  }
  func.func @transform_4(%arg0: i32) -> (i32, i32, i32) {
    %c0_i32 = arith.constant 0 : i32
    %c0_i32_0 = arith.constant 0 : i32
    %c0_i32_1 = arith.constant 0 : i32
    return %arg0, %c0_i32, %c0_i32_0 : i32, i32, i32
  }
  func.func @transform_5(%arg0: i32) -> (i32, i32) {
    %c0_i32 = arith.constant 0 : i32
    %c0_i32_0 = arith.constant 0 : i32
    %c0_i32_1 = arith.constant 0 : i32
    return %c0_i32, %c0_i32_0 : i32, i32
  }
  func.func @transform_6(%arg0: i32) -> (i32, i32) {
    %c0_i32 = arith.constant 0 : i32
    %c0_i32_0 = arith.constant 0 : i32
    %c0_i32_1 = arith.constant 0 : i32
    return %c0_i32, %c0_i32_0 : i32, i32
  }
  func.func @transform_7(%arg0: i32) -> (i32, i32) {
    %c0_i32 = arith.constant 0 : i32
    %c0_i32_0 = arith.constant 0 : i32
    %c0_i32_1 = arith.constant 0 : i32
    return %c0_i32, %c0_i32_0 : i32, i32
  }
  func.func @transform_8(%arg0: i32) -> (i32, i32, i32) {
    %c0_i32 = arith.constant 0 : i32
    %c0_i32_0 = arith.constant 0 : i32
    %c0_i32_1 = arith.constant 0 : i32
    return %arg0, %c0_i32, %c0_i32_0 : i32, i32, i32
  }
}

</mosaic_0001>

<bundles_post_ra>
// kernel: cross_attention_block.1
= control target key start
LH: loop header
LB: loop body
LE: loop exit
PB: predicated region body
PF: predicated region fallthrough
CT: control target
= control target key end

     0   :  { %vm119_vm0 = vcmask 130048   ;;  %v1625_v13 = vmov 0   ;;  %vm30_vm1 = vcmask 134144   ;;  %vm49_vm2 = vcmask 1044344   ;;  %s1628_s24 = smov 113   ;;  %s1630_s25 = smov 1   ;;  %s2213_s0 = inlined_call_operand.vmem [shape: f32[2,16,256], index: 0, kind: input, shape index: {}]   ;;  %s2214_s5 = inlined_call_operand.vmem [shape: f32[16,16], index: 5, kind: input, shape index: {}]   ;;  %s2215_s2 = inlined_call_operand.vmem [shape: f32[16,1], index: 2, kind: input, shape index: {}]   ;;  %s2216_s3 = inlined_call_operand.vmem [shape: f32[2,16,1], index: 3, kind: input, shape index: {}]   ;;  %s2217_s1 = inlined_call_operand.vmem [shape: f32[16,1], index: 1, kind: input, shape index: {}]   ;;  %s2218_s4 = inlined_call_operand.vmem [shape: f32[2,16,1], index: 4, kind: input, shape index: {}]   ;;  %s2219_s6 = inlined_call_operand.vmem [shape: bf16[16,144], index: 6, kind: input, shape index: {}]   ;;  %s2220_s7 = inlined_call_operand.vmem [shape: f32[16,1], index: 7, kind: input, shape index: {}]   ;;  %s2221_s8 = inlined_call_operand.vmem [shape: f32[2,16,256], index: 8, kind: output, shape index: {}]  }
   0x1   :  { %v111_v0 = vld [vmem:[%s2213_s0 + $0x10] sm:$0xff]  ;;  %v112_v1 = vld [vmem:[%s2213_s0 + $0x18] sm:$0xff]  ;;  %v109_v5 = vld [vmem:[%s2213_s0] sm:$0xff]  ;;  %1552 = vset.pattern.permute.xlu0 %v1625_v13  ;;  %1553 = vset.pattern.permute.xlu1 %v1625_v13  ;;  %31 = vst.msk [vmem:[#allocation2 + $0x4] sm:$0xf] %vm30_vm1, %v1625_v13  ;;  %s1631_s26 = smov 15  }
   0x2   :  { %v1440_v2 = vld [vmem:[%s2213_s0 + $0x30] sm:$0xff]  ;;  %v116_v3 = vadd.f32 %v112_v1, %v111_v0  ;;  %v1441_v4 = vld [vmem:[%s2213_s0 + $0x38] sm:$0xff]  ;;  %v110_v6 = vld [vmem:[%s2213_s0 + $0x8] sm:$0xff]  ;;  %32 = vst.msk [vmem:[#allocation2 + $0x14] sm:$0xf] %vm30_vm1, %v1625_v13  ;;  %s1632_s27 = smov 17  }
   0x3   :  { %v800_v7 = vadd.f32 %v1441_v4, %v1440_v2  ;;  %v1438_v8 = vld [vmem:[%s2213_s0 + $0x20] sm:$0xff]  ;;  %v1439_v9 = vld [vmem:[%s2213_s0 + $0x28] sm:$0xff]  ;;  %v113_v10 = vadd.f32 %v110_v6, %v109_v5  ;;  %33 = vst.msk [vmem:[#allocation2 + $0x24] sm:$0xf] %vm30_vm1, %v1625_v13  ;;  %34 = vst.msk [vmem:[#allocation2 + $0x34] sm:$0xf] %vm30_vm1, %v1625_v13 }
   0x4   :  { %117 = vadd.xlane.f32.xlu0 %v116_v3  ;;  %v797_v11 = vadd.f32 %v1439_v9, %v1438_v8  ;;  %v105_v12 = vld [vmem:[%s2214_s5] sm:$0xff]  ;;  %v1713_v17 = vld [vmem:[%s2214_s5 + $0x8] sm:$0xff]  ;;  %35 = vst.msk [vmem:[#allocation2 + $0x44] sm:$0xf] %vm30_vm1, %v1625_v13  ;;  %36 = vst.msk [vmem:[#allocation2 + $0x54] sm:$0xf] %vm30_vm1, %v1625_v13 }
   0x5   :  { %801 = vadd.xlane.f32.xlu1 %v800_v7  ;;  %1519 = vmatprep.mubr.msk.f32.mxu0 %vm119_vm0, %v105_v12  ;;  %v102_v47 = vld [vmem:[%s2215_s2 + $0x8] sm:$0xff]  ;;  %v99_v49 = vld [vmem:[%s2217_s1] sm:$0xff]  ;;  %v1447_v7 = vld [vmem:[%s2216_s3 + $0x18] sm:$0xff]  ;;  %37 = vst.msk [vmem:[#allocation2 + $0x64] sm:$0xf] %vm30_vm1, %v1625_v13  ;;  %s1629_s5 = smov 127  }
   0x6   :  { %1533 = vmatprep.mubr.msk.f32.mxu1 %vm119_vm0, %v105_v12  ;;  %v345_v48 = vld [vmem:[%s2216_s3 + $0x8] sm:$0xff]  ;;  %v101_v52 = vld [vmem:[%s2215_s2] sm:$0xff]  ;;  %38 = vst.msk [vmem:[#allocation2 + $0x74] sm:$0xf] %vm30_vm1, %v1625_v13  ;;  %41 = vst.msk [vmem:[#allocation2 + $0xa4] sm:$0xf] %vm30_vm1, %v1625_v13 }
   0x7   :  { %v347_v50 = vadd.f32 1.0, %v345_v48  ;;  %v100_v51 = vld [vmem:[%s2217_s1 + $0x8] sm:$0xff]  ;;  %v344_v53 = vld [vmem:[%s2216_s3] sm:$0xff]  ;;  %42 = vst.msk [vmem:[#allocation2 + $0xb4] sm:$0xf] %vm30_vm1, %v1625_v13  ;;  %s1633_s28 = smov 111  }
   0x8   :  { %114 = vadd.xlane.f32.xlu0 %v113_v10  ;;  %v346_v54 = vadd.f32 1.0, %v344_v53  ;;  %v1005_v10 = vadd.f32 1.0, %v1447_v7  ;;  %43 = vst.msk [vmem:[#allocation2 + $0xc4] sm:$0xf] %vm30_vm1, %v1625_v13  ;;  %44 = vst.msk [vmem:[#allocation2 + $0xd4] sm:$0xf] %vm30_vm1, %v1625_v13 }
   0x9   :  { %798 = vadd.xlane.f32.xlu1 %v797_v11  ;;  %45 = vst.msk [vmem:[#allocation2 + $0xe4] sm:$0xf] %vm30_vm1, %v1625_v13  ;;  %46 = vst.msk [vmem:[#allocation2 + $0xf4] sm:$0xf] %vm30_vm1, %v1625_v13  ;;  %vm442_vm7 = vcmask 1047556   ;;  %vm581_vm8 = vcmask 1044352  }
   0xa   :  { %47 = vst.msk [vmem:[#allocation2 + $0x104] sm:$0xf] %vm30_vm1, %v1625_v13  ;;  %48 = vst.msk [vmem:[#allocation2 + $0x114] sm:$0xf] %vm30_vm1, %v1625_v13  ;;  %vm574_vm9 = vcmask 916480   ;;  %vm584_vm10 = vcmask 912384  }
   0xb   :  { %50 = vst.msk [vmem:[#allocation2 + $0x8] sm:$0xf] %vm49_vm2, %v1625_v13  ;;  %51 = vst.msk [vmem:[#allocation2 + $0x18] sm:$0xf] %vm49_vm2, %v1625_v13  ;;  %vm469_vm12 = vcmask 1043584   ;;  %vm561_vm14 = vcmask 1044360  }
   0xc   :  { %52 = vst.msk [vmem:[#allocation2 + $0x28] sm:$0xf] %vm49_vm2, %v1625_v13  ;;  %53 = vst.msk [vmem:[#allocation2 + $0x38] sm:$0xf] %vm49_vm2, %v1625_v13  ;;  %vm554_vm15 = vcmask 924672  }
   0xd   :  { %54 = vst.msk [vmem:[#allocation2 + $0x48] sm:$0xf] %vm49_vm2, %v1625_v13  ;;  %55 = vst.msk [vmem:[#allocation2 + $0x58] sm:$0xf] %vm49_vm2, %v1625_v13 }
   0xe   :  { %56 = vst.msk [vmem:[#allocation2 + $0x68] sm:$0xf] %vm49_vm2, %v1625_v13  ;;  %57 = vst.msk [vmem:[#allocation2 + $0x78] sm:$0xf] %vm49_vm2, %v1625_v13 }
   0xf   :  { %60 = vst.msk [vmem:[#allocation2 + $0xa8] sm:$0xf] %vm49_vm2, %v1625_v13  ;;  %61 = vst.msk [vmem:[#allocation2 + $0xb8] sm:$0xf] %vm49_vm2, %v1625_v13 }
  0x10   :  { %62 = vst.msk [vmem:[#allocation2 + $0xc8] sm:$0xf] %vm49_vm2, %v1625_v13  ;;  %63 = vst.msk [vmem:[#allocation2 + $0xd8] sm:$0xf] %vm49_vm2, %v1625_v13 }
  0x11   :  { %64 = vst.msk [vmem:[#allocation2 + $0xe8] sm:$0xf] %vm49_vm2, %v1625_v13  ;;  %65 = vst.msk [vmem:[#allocation2 + $0xf8] sm:$0xf] %vm49_vm2, %v1625_v13 }
  0x12   :  { %66 = vst.msk [vmem:[#allocation2 + $0x108] sm:$0xf] %vm49_vm2, %v1625_v13  ;;  %67 = vst.msk [vmem:[#allocation2 + $0x118] sm:$0xf] %vm49_vm2, %v1625_v13 }
  0x13   :  { %vm1989_vm11 = vmor %vm442_vm7, %vm581_vm8 }
  0x14   :  { %vm2008_vm13 = vmor %vm442_vm7, %vm469_vm12  ;;  %vm490_vm12 = vcmask 121856  }
  0x15   :  { %vm2021_vm1 = vmor %vm442_vm7, %vm561_vm14  ;;  %vm441_vm14 = vcmask 1043592  }
  0x8d   :  { %v118_v14 = vpop.xlane.xlu0 %117 }
  0x8e   :  { %1515 = vmatprep.subr.mxu0 %v118_v14  ;;  %v802_v15 = vpop.xlane.xlu1 %801 }
  0x8f   :  { %1516 = vmatpush3.msra.mxu0 %v118_v14  ;;  %1529 = vmatprep.subr.mxu1 %v802_v15  ;;  %v1449_v14 = vld [vmem:[%s2218_s4 + $0x18] sm:$0xff] }
  0x90   :  { %1530 = vmatpush3.msra.mxu1 %v802_v15  ;;  %v1448_v15 = vld [vmem:[%s2218_s4 + $0x10] sm:$0xff] }
  0x91   :  { %v115_v16 = vpop.xlane.xlu0 %114 }
  0x92   :  { %1517 = vmatprep.subr.mxu0 %v115_v16  ;;  %v799_v18 = vpop.xlane.xlu1 %798 }
  0x93   :  { %1518 = vmatpush3.msra.mxu0 %v115_v16  ;;  %1531 = vmatprep.subr.mxu1 %v799_v18 }
  0x94   :  { %1520 = vmatmul.mubr.msk.f32.vlgmr.msra.gmra.mxu0 %vm119_vm0, %v1713_v17  ;;  %1532 = vmatpush3.msra.mxu1 %v799_v18 }
  0x95   :  { %1534 = vmatmul.mubr.msk.f32.vlgmr.msra.gmra.mxu1 %vm119_vm0, %v1713_v17  ;;  %1526 = vmatprep.mubr.msk.f32.mxu0 %vm119_vm0, %v105_v12 }
  0x96   :  { %1540 = vmatprep.mubr.msk.f32.mxu1 %vm119_vm0, %v105_v12 }
 0x154   :  { %v1521_v19 = vpop.f32.mrf.mxu0 }
 0x155   :  { %208 = vperm.xlu0 %1552, %v1521_v19   ;;  %v1535_v21 = vpop.f32.mrf.mxu1 }
 0x156   :  { %v192_v20 = vpop.f32.mrf.mxu0 }
 0x157   :  { %203 = vperm.xlu1 %1553, %v192_v20   ;;  %v869_v22 = vpop.f32.mrf.mxu1 }
 0x15b   :  { %885 = vperm.xlu1 %1553, %v1535_v21  }
 0x15f   :  { %880 = vperm.xlu1 %1553, %v869_v22  }
 0x1d0   :  { %v209_v23 = vpop.permute.xlu0 %208 }
 0x1d1   :  { %v1721_v24 = vsub.f32 %v111_v0, %v209_v23  ;;  %v1723_v25 = vsub.f32 %v112_v1, %v209_v23 }
 0x1d2   :  { %v204_v26 = vpop.permute.xlu1 %203 }
 0x1d3   :  { %v1725_v27 = vsub.f32 %v109_v5, %v204_v26  ;;  %v1727_v28 = vsub.f32 %v110_v6, %v204_v26  ;;  %v217_v29 = vmul.f32 %v1721_v24, %v1721_v24  ;;  %v218_v30 = vmul.f32 %v1723_v25, %v1723_v25  ;;  %v363_v5 = vld [vmem:[%s2218_s4 + $0x8] sm:$0xff]  ;;  %v362_v6 = vld [vmem:[%s2218_s4] sm:$0xff]  ;;  %s1627_s4 = smov 16  }
 0x1d5   :  { %v222_v31 = vadd.f32 %v218_v30, %v217_v29  ;;  %v215_v32 = vmul.f32 %v1725_v27, %v1725_v27  ;;  %v216_v33 = vmul.f32 %v1727_v28, %v1727_v28 }
 0x1d6   :  { %v886_v34 = vpop.permute.xlu1 %885 }
 0x1d7   :  { %v1737_v35 = vsub.f32 %v1440_v2, %v886_v34  ;;  %v1739_v36 = vsub.f32 %v1441_v4, %v886_v34  ;;  %223 = vadd.xlane.f32.xlu1 %v222_v31  ;;  %v219_v37 = vadd.f32 %v216_v33, %v215_v32 }
 0x1d9   :  { %220 = vadd.xlane.f32.xlu0 %v219_v37  ;;  %v894_v38 = vmul.f32 %v1737_v35, %v1737_v35  ;;  %v895_v39 = vmul.f32 %v1739_v36, %v1739_v36 }
 0x1da   :  { %v881_v40 = vpop.permute.xlu1 %880 }
 0x1db   :  { %v1745_v41 = vsub.f32 %v1438_v8, %v881_v40  ;;  %v1747_v42 = vsub.f32 %v1439_v9, %v881_v40  ;;  %v899_v43 = vadd.f32 %v895_v39, %v894_v38  ;;  %v1446_v9 = vld [vmem:[%s2216_s3 + $0x10] sm:$0xff]  ;;  %s1626_s3 = smov 112  }
 0x1dc   :  { %v1004_v12 = vadd.f32 1.0, %v1446_v9 }
 0x1dd   :  { %900 = vadd.xlane.f32.xlu1 %v899_v43  ;;  %v892_v44 = vmul.f32 %v1745_v41, %v1745_v41  ;;  %v893_v45 = vmul.f32 %v1747_v42, %v1747_v42 }
 0x1df   :  { %v896_v46 = vadd.f32 %v893_v45, %v892_v44 }
 0x1e1   :  { %897 = vadd.xlane.f32.xlu1 %v896_v46 }
 0x1ef   :  { %337 = vperm.xlu0 %1552, %v102_v47  }
 0x1f2   :  { %318 = vperm.xlu1 %1553, %v99_v49  }
 0x1f3   :  { %355 = vperm.xlu0 %1552, %v347_v50  }
 0x1f6   :  { %323 = vperm.xlu1 %1553, %v100_v51  }
 0x1fa   :  { %332 = vperm.xlu1 %1553, %v101_v52  }
 0x1fe   :  { %350 = vperm.xlu1 %1553, %v346_v54  }
 0x260   :  { %v224_v55 = vpop.xlane.xlu1 %223 }
 0x261   :  { %1522 = vmatprep.subr.mxu0 %v224_v55 }
 0x262   :  { %v221_v56 = vpop.xlane.xlu0 %220  ;;  %1523 = vmatpush3.msra.mxu0 %v224_v55 }
 0x263   :  { %1524 = vmatprep.subr.mxu0 %v221_v56 }
 0x264   :  { %1525 = vmatpush3.msra.mxu0 %v221_v56 }
 0x265   :  { %1527 = vmatmul.mubr.msk.f32.vlgmr.msra.gmra.mxu0 %vm119_vm0, %v1713_v17 }
 0x266   :  { %v901_v57 = vpop.xlane.xlu1 %900 }
 0x267   :  { %1536 = vmatprep.subr.mxu1 %v901_v57 }
 0x268   :  { %1537 = vmatpush3.msra.mxu1 %v901_v57 }
 0x26a   :  { %v898_v58 = vpop.xlane.xlu1 %897  ;;  %v338_v18 = vpop.permute.xlu0 %337 }
 0x26b   :  { %1538 = vmatprep.subr.mxu1 %v898_v58 }
 0x26c   :  { %1539 = vmatpush3.msra.mxu1 %v898_v58 }
 0x26d   :  { %1541 = vmatmul.mubr.msk.f32.vlgmr.msra.gmra.mxu1 %vm119_vm0, %v1713_v17 }
 0x26e   :  { %v319_v16 = vpop.permute.xlu1 %318  ;;  %v356_v20 = vpop.permute.xlu0 %355 }
 0x272   :  { %v324_v17 = vpop.permute.xlu1 %323 }
 0x276   :  { %v333_v19 = vpop.permute.xlu1 %332 }
 0x27a   :  { %v351_v21 = vpop.permute.xlu1 %350 }
 0x325   :  { %v1528_v59 = vpop.f32.mrf.mxu0 }
 0x326   :  { %v297_v60 = vadd.f32 1e-05, %v1528_v59 }
 0x327   :  { %v291_v61 = vpop.f32.mrf.mxu0 }
 0x328   :  { %1581 = vrsqrt.f32 %v297_v60  ;;  %v292_v62 = vadd.f32 1e-05, %v291_v61 }
 0x32a   :  { %1583 = vrsqrt.f32 %v292_v62 }
 0x32d   :  { %v1542_v63 = vpop.f32.mrf.mxu1 }
 0x32e   :  { %v974_v0 = vadd.f32 1e-05, %v1542_v63 }
 0x32f   :  { %v968_v1 = vpop.f32.mrf.mxu1 }
 0x330   :  { %1585 = vrsqrt.f32 %v974_v0  ;;  %v969_v2 = vadd.f32 1e-05, %v968_v1 }
 0x332   :  { %1587 = vrsqrt.f32 %v969_v2 }
 0x335   :  { %v1582_v3 = vpop.eup %1581 }
 0x336   :  { %309 = vperm.xlu0 %1552, %v1582_v3  }
 0x337   :  { %v1584_v4 = vpop.eup %1583 }
 0x338   :  { %304 = vperm.xlu1 %1553, %v1584_v4  }
 0x33a   :  { %371 = vperm.xlu0 %1552, %v363_v5  }
 0x33c   :  { %366 = vperm.xlu1 %1553, %v362_v6  }
 0x33d   :  { %v1586_v8 = vpop.eup %1585 }
 0x33e   :  { %986 = vperm.xlu0 %1552, %v1586_v8  }
 0x33f   :  { %v1588_v11 = vpop.eup %1587 }
 0x340   :  { %981 = vperm.xlu1 %1553, %v1588_v11  }
 0x342   :  { %1013 = vperm.xlu0 %1552, %v1005_v10  }
 0x344   :  { %1008 = vperm.xlu1 %1553, %v1004_v12  }
 0x346   :  { %1030 = vperm.xlu0 %1552, %v1449_v14  }
 0x348   :  { %1025 = vperm.xlu1 %1553, %v1448_v15  }
 0x3b1   :  { %v310_v22 = vpop.permute.xlu0 %309 }
 0x3b2   :  { %v314_v23 = vmul.f32 %v310_v22, %v1721_v24  ;;  %v315_v26 = vmul.f32 %v310_v22, %v1723_v25 }
 0x3b3   :  { %v305_v29 = vpop.permute.xlu1 %304 }
 0x3b4   :  { %v328_v30 = vmul.f32 %v324_v17, %v314_v23  ;;  %v329_v31 = vmul.f32 %v324_v17, %v315_v26  ;;  %v312_v32 = vmul.f32 %v305_v29, %v1725_v27  ;;  %v313_v33 = vmul.f32 %v305_v29, %v1727_v28 }
 0x3b5   :  { %v372_v34 = vpop.permute.xlu0 %371 }
 0x3b6   :  { %v326_v13 = vmul.f32 %v319_v16, %v312_v32  ;;  %v327_v37 = vmul.f32 %v319_v16, %v313_v33  ;;  %v342_v38 = vadd.f32 %v338_v18, %v328_v30  ;;  %v343_v39 = vadd.f32 %v338_v18, %v329_v31 }
 0x3b7   :  { %v367_v40 = vpop.permute.xlu1 %366 }
 0x3b8   :  { %v360_v43 = vmul.f32 %v356_v20, %v342_v38  ;;  %v361_v44 = vmul.f32 %v356_v20, %v343_v39  ;;  %v340_v45 = vadd.f32 %v333_v19, %v326_v13  ;;  %v341_v46 = vadd.f32 %v333_v19, %v327_v37 }
 0x3b9   :  { %v987_v24 = vpop.permute.xlu0 %986 }
 0x3ba   :  { %v1861_v47 = vadd.f32 %v372_v34, %v360_v43  ;;  %v1863_v25 = vadd.f32 %v372_v34, %v361_v44  ;;  %v358_v48 = vmul.f32 %v351_v21, %v340_v45  ;;  %v359_v49 = vmul.f32 %v351_v21, %v341_v46 }
 0x3bb   :  { %v991_v27 = vmul.f32 %v987_v24, %v1737_v35  ;;  %v992_v28 = vmul.f32 %v987_v24, %v1739_v36  ;;  %v982_v50 = vpop.permute.xlu1 %981  ;;  %v68_v46 = vlaneseq }
 0x3bc   :  { %v1409_v51 = vmul.f32 -1.442695, %v1861_v47  ;;  %v1410_v52 = vmul.f32 -1.442695, %v1863_v25  ;;  %v1869_v53 = vadd.f32 %v367_v40, %v358_v48  ;;  %v1871_v54 = vadd.f32 %v367_v40, %v359_v49 }
 0x3bd   :  { %v995_v55 = vmul.f32 %v991_v27, %v324_v17  ;;  %v996_v56 = vmul.f32 %v992_v28, %v324_v17  ;;  %v989_v57 = vmul.f32 %v982_v50, %v1745_v41  ;;  %v990_v58 = vmul.f32 %v982_v50, %v1747_v42  ;;  %v1014_v59 = vpop.permute.xlu0 %1013 }
 0x3be   :  { %1589 = vpow2.f32 %v1409_v51  ;;  %v1407_v35 = vmul.f32 -1.442695, %v1869_v53  ;;  %v1408_v36 = vmul.f32 -1.442695, %v1871_v54  ;;  %v69_v49 = vand.u32 127, %v68_v46 }
 0x3bf   :  { %1591 = vpow2.f32 %v1410_v52  ;;  %v993_v60 = vmul.f32 %v989_v57, %v319_v16  ;;  %v994_v61 = vmul.f32 %v990_v58, %v319_v16  ;;  %v999_v62 = vadd.f32 %v995_v55, %v338_v18  ;;  %v1009_v63 = vpop.permute.xlu1 %1008 }
 0x3c0   :  { %1593 = vpow2.f32 %v1407_v35  ;;  %v1000_v0 = vadd.f32 %v996_v56, %v338_v18  ;;  %v75_v35 = vand.u32 15, %v69_v49 }
 0x3c1   :  { %1595 = vpow2.f32 %v1408_v36  ;;  %v1018_v1 = vmul.f32 %v1014_v59, %v999_v62  ;;  %v997_v2 = vadd.f32 %v993_v60, %v333_v19  ;;  %v998_v3 = vadd.f32 %v994_v61, %v333_v19  ;;  %v1031_v41 = vpop.permute.xlu0 %1030 }
 0x3c2   :  { %v1019_v4 = vmul.f32 %v1014_v59, %v1000_v0  ;;  %vm1913_vm3 = vcmp.ne.s32.totalorder %v75_v35, 15  ;;  %vm1927_vm5 = vcmp.ne.s32.totalorder %v75_v35, 0 }
 0x3c3   :  { %v1016_v42 = vmul.f32 %v1009_v63, %v997_v2  ;;  %v1017_v5 = vmul.f32 %v1009_v63, %v998_v3  ;;  %v1035_v6 = vadd.f32 %v1031_v41, %v1018_v1  ;;  %v1026_v7 = vpop.permute.xlu1 %1025 }
 0x3c4   :  { %v1036_v8 = vadd.f32 %v1031_v41, %v1019_v4 }
 0x3c5   :  { %v1452_v9 = vmul.f32 -1.442695, %v1035_v6  ;;  %v1033_v10 = vadd.f32 %v1026_v7, %v1016_v42  ;;  %v1034_v11 = vadd.f32 %v1026_v7, %v1017_v5 }
 0x3c6   :  { %v1453_v12 = vmul.f32 -1.442695, %v1036_v8 }
 0x3c7   :  { %1597 = vpow2.f32 %v1452_v9  ;;  %v1450_v14 = vmul.f32 -1.442695, %v1033_v10  ;;  %v1451_v15 = vmul.f32 -1.442695, %v1034_v11 }
 0x3c8   :  { %1599 = vpow2.f32 %v1453_v12 }
 0x3c9   :  { %1601 = vpow2.f32 %v1450_v14 }
 0x3ca   :  { %1603 = vpow2.f32 %v1451_v15 }
 0x3cb   :  { %v1590_v16 = vpop.eup %1589 }
 0x3cc   :  { %v1592_v17 = vpop.eup %1591  ;;  %v392_v18 = vadd.f32 1.0, %v1590_v16 }
 0x3cd   :  { %v1594_v19 = vpop.eup %1593  ;;  %v393_v20 = vadd.f32 1.0, %v1592_v17 }
 0x3ce   :  { %v1596_v21 = vpop.eup %1595  ;;  %1605 = vrcp.f32 %v392_v18  ;;  %v390_v22 = vadd.f32 1.0, %v1594_v19 }
 0x3cf   :  { %1607 = vrcp.f32 %v393_v20  ;;  %v391_v23 = vadd.f32 1.0, %v1596_v21 }
 0x3d0   :  { %1609 = vrcp.f32 %v390_v22 }
 0x3d1   :  { %1611 = vrcp.f32 %v391_v23 }
 0x3d4   :  { %v1598_v26 = vpop.eup %1597 }
 0x3d5   :  { %v1600_v29 = vpop.eup %1599  ;;  %v1051_v30 = vadd.f32 1.0, %v1598_v26 }
 0x3d6   :  { %v1602_v31 = vpop.eup %1601  ;;  %v1052_v32 = vadd.f32 1.0, %v1600_v29  ;;  %v1572_v29 = vld [vmem:[%s2219_s6 + $0x4] ss:$8 sps:$4 sm:$0xff]  }
 0x3d7   :  { %v1604_v33 = vpop.eup %1603  ;;  %1613 = vrcp.f32 %v1051_v30  ;;  %v1049_v34 = vadd.f32 1.0, %v1602_v31  ;;  %1437 = vmatprep.mubr.msk.bf16.mxu0 %vm119_vm0, %v1572_v29  ;;  %1478 = vmatprep.mubr.msk.bf16.mxu1 %vm119_vm0, %v1572_v29  ;;  %v104_v30 = vld [vmem:[%s2220_s7 + $0x8] sm:$0xff]  ;;  %v103_v31 = vld [vmem:[%s2220_s7] sm:$0xff] }
 0x3d8   :  { %1615 = vrcp.f32 %v1052_v32  ;;  %v1050_v13 = vadd.f32 1.0, %v1604_v33 }
 0x3d9   :  { %1617 = vrcp.f32 %v1049_v34 }
 0x3da   :  { %1619 = vrcp.f32 %v1050_v13 }
 0x3db   :  { %v1606_v37 = vpop.eup %1605 }
 0x3dc   :  { %v1608_v38 = vpop.eup %1607  ;;  %v1878_v39 = vmul.f32 %v1606_v37, %v1861_v47 }
 0x3dd   :  { %v1610_v40 = vpop.eup %1609  ;;  %v1881_v43 = vmul.f32 %v1608_v38, %v1863_v25 }
 0x3de   :  { %v1612_v44 = vpop.eup %1611  ;;  %v1884_v45 = vmul.f32 %v1610_v40, %v1869_v53  ;;  %v410_v0 = vsel %vm1913_vm3, %v1878_v39, 0.0  ;;  %v416_v5 = vsel %vm1927_vm5, %v1878_v39, 0.0 }
 0x3df   :  { %v1887_v24 = vmul.f32 %v1612_v44, %v1871_v54  ;;  %v1490_v48 = vpack.c.bf16 %v1881_v43, %v1878_v39  ;;  %v70_v54 = vadd.s32 128, %v69_v49 }
 0x3e0   :  { %v1622_v27 = vpack.c.bf16 %v1878_v39, %v1884_v45  ;;  %v408_v41 = vsel %vm1913_vm3, %v1884_v45, 0.0 }
 0x3e1   :  { %570 = vrot.lane.b32.xlu0 %v1490_v48, %s1626_s3  ;;  %v1489_v47 = vpack.c.bf16 %v1887_v24, %v1884_v45  ;;  %v1621_v25 = vpack.c.bf16 %v1881_v43, %v1887_v24  ;;  %v82_v36 = vand.u32 15, %v70_v54 }
 0x3e3   :  { %568 = vrot.lane.b32.xlu1 %v1489_v47, %s1626_s3  ;;  %vm1917_vm4 = vcmp.ne.s32.totalorder %v82_v36, 15  ;;  %vm1931_vm6 = vcmp.ne.s32.totalorder %v82_v36, 0 }
 0x3e4   :  { %v1614_v28 = vpop.eup %1613  ;;  %v411_v1 = vsel %vm1917_vm4, %v1881_v43, 0.0  ;;  %v409_v4 = vsel %vm1917_vm4, %v1887_v24, 0.0  ;;  %v415_v9 = vsel %vm1931_vm6, %v1887_v24, 0.0 }
 0x3e5   :  { %v1616_v50 = vpop.eup %1615  ;;  %v1897_v51 = vmul.f32 %v1614_v28, %v1035_v6  ;;  %v1488_v42 = vpack.c.bf16 %v411_v1, %v410_v0  ;;  %v417_v6 = vsel %vm1931_vm6, %v1881_v43, 0.0  ;;  %v1487_v7 = vpack.c.bf16 %v409_v4, %v408_v41 }
 0x3e6   :  { %v1618_v52 = vpop.eup %1617  ;;  %v1899_v53 = vmul.f32 %v1616_v50, %v1036_v8  ;;  %v414_v8 = vsel %vm1927_vm5, %v1884_v45, 0.0 }
 0x3e7   :  { %v1620_v55 = vpop.eup %1619  ;;  %v1901_v56 = vmul.f32 %v1618_v52, %v1033_v10  ;;  %v1492_v10 = vpack.c.bf16 %v417_v6, %v416_v5  ;;  %v1491_v14 = vpack.c.bf16 %v415_v9, %v414_v8  ;;  %v1075_v19 = vsel %vm1927_vm5, %v1897_v51, 0.0 }
 0x3e8   :  { %v1903_v57 = vmul.f32 %v1620_v55, %v1034_v11  ;;  %v1496_v58 = vpack.c.bf16 %v1899_v53, %v1897_v51  ;;  %v1069_v11 = vsel %vm1913_vm3, %v1897_v51, 0.0  ;;  %v1070_v12 = vsel %vm1917_vm4, %v1899_v53, 0.0 }
 0x3e9   :  { %v1623_v60 = vpack.c.bf16 %v1897_v51, %v1901_v56  ;;  %v1067_v15 = vsel %vm1913_vm3, %v1901_v56, 0.0  ;;  %v1494_v17 = vpack.c.bf16 %v1070_v12, %v1069_v11  ;;  %v1076_v20 = vsel %vm1931_vm6, %v1899_v53, 0.0 }
 0x3ea   :  { %1205 = vrot.lane.b32.xlu0 %v1496_v58, %s1626_s3  ;;  %v1495_v59 = vpack.c.bf16 %v1903_v57, %v1901_v56  ;;  %v1624_v61 = vpack.c.bf16 %v1899_v53, %v1903_v57  ;;  %v1068_v16 = vsel %vm1917_vm4, %v1903_v57, 0.0  ;;  %v1073_v21 = vsel %vm1927_vm5, %v1901_v56, 0.0 }
 0x3eb   :  { %v1493_v18 = vpack.c.bf16 %v1068_v16, %v1067_v15  ;;  %v1074_v22 = vsel %vm1931_vm6, %v1903_v57, 0.0  ;;  %v1498_v23 = vpack.c.bf16 %v1076_v20, %v1075_v19  ;;  %vm564_vm3 = vcmask 920576  }
 0x3ec   :  { %1203 = vrot.lane.b32.xlu1 %v1495_v59, %s1626_s3  ;;  %v1497_v26 = vpack.c.bf16 %v1074_v22, %v1073_v21  ;;  %vm541_vm4 = vcmask 1044472   ;;  %vm534_vm5 = vcmask 1039360   ;;  %vm544_vm6 = vcmask 1035264  }
 0x3ed   :  { %vm2041_vm8 = vmor %vm442_vm7, %vm541_vm4 }
 0x3ee   :  { %458 = vrot.lane.b32.xlu0 %v1490_v48, %s1627_s4  ;;  %vm2126_vm4 = vmor %vm442_vm7, %vm49_vm2 }
 0x3f0   :  { %456 = vrot.lane.b32.xlu1 %v1489_v47, %s1627_s4 }
 0x3f2   :  { %1113 = vrot.lane.b32.xlu0 %v1496_v58, %s1627_s4 }
 0x3f4   :  { %1111 = vrot.lane.b32.xlu1 %v1495_v59, %s1627_s4 }
 0x3f6   :  { %550 = vrot.lane.b32.xlu0 %v1488_v42, %s1628_s24 }
 0x3f8   :  { %548 = vrot.lane.b32.xlu1 %v1487_v7, %s1628_s24 }
 0x3fa   :  { %530 = vrot.lane.b32.xlu0 %v1492_v10, %s1629_s5 }
 0x3fc   :  { %528 = vrot.lane.b32.xlu1 %v1491_v14, %s1629_s5 }
 0x3fe   :  { %1189 = vrot.lane.b32.xlu0 %v1494_v17, %s1628_s24 }
 0x400   :  { %1187 = vrot.lane.b32.xlu1 %v1493_v18, %s1628_s24 }
 0x402   :  { %506 = vrot.lane.b32.xlu0 %v1488_v42, %s1630_s25 }
 0x404   :  { %504 = vrot.lane.b32.xlu1 %v1487_v7, %s1630_s25 }
 0x406   :  { %1173 = vrot.lane.b32.xlu0 %v1498_v23, %s1629_s5 }
 0x408   :  { %1171 = vrot.lane.b32.xlu1 %v1497_v26, %s1629_s5 }
 0x40a   :  { %486 = vrot.lane.b32.xlu0 %v1492_v10, %s1631_s26 }
 0x40c   :  { %484 = vrot.lane.b32.xlu1 %v1491_v14, %s1631_s26 }
 0x40e   :  { %1153 = vrot.lane.b32.xlu0 %v1494_v17, %s1630_s25 }
 0x410   :  { %1151 = vrot.lane.b32.xlu1 %v1493_v18, %s1630_s25 }
 0x412   :  { %430 = vrot.lane.b32.xlu0 %v1488_v42, %s1632_s27 }
 0x414   :  { %428 = vrot.lane.b32.xlu1 %v1487_v7, %s1632_s27 }
 0x416   :  { %1137 = vrot.lane.b32.xlu0 %v1498_v23, %s1631_s26 }
 0x418   :  { %1135 = vrot.lane.b32.xlu1 %v1497_v26, %s1631_s26 }
 0x41a   :  { %590 = vrot.lane.b32.xlu0 %v1492_v10, %s1633_s28 }
 0x41c   :  { %588 = vrot.lane.b32.xlu1 %v1491_v14, %s1633_s28 }
 0x41e   :  { %1089 = vrot.lane.b32.xlu0 %v1494_v17, %s1632_s27 }
 0x420   :  { %1087 = vrot.lane.b32.xlu1 %v1493_v18, %s1632_s27 }
 0x422   :  { %1221 = vrot.lane.b32.xlu0 %v1498_v23, %s1633_s28 }
 0x424   :  { %1219 = vrot.lane.b32.xlu1 %v1497_v26, %s1633_s28 }
 0x426   :  { %632 = vperm.xlu0 %1552, %v104_v30  }
 0x428   :  { %627 = vperm.xlu1 %1553, %v103_v31  }
 0x453   :  { %v571_v32 = vpop.permute.xlu0 %570 }
 0x454   :  { %v573_v34 = vrot.slane %v571_v32, 4 }
 0x455   :  { %v569_v13 = vpop.permute.xlu1 %568 }
 0x456   :  { %v576_v37 = vsel %vm574_vm9, %v573_v34, %v571_v32  ;;  %587 = vst.msk [vmem:[#allocation2 + $0xf8] sm:$0xf] %vm584_vm10, %v573_v34  ;;  %v572_v38 = vrot.slane %v569_v13, 4 }
 0x457   :  { %586 = vst.msk [vmem:[#allocation2 + $0xf0] sm:$0xff] %vm1989_vm11, %v576_v37 }
 0x458   :  { %v575_v40 = vsel %vm574_vm9, %v572_v38, %v569_v13  ;;  %585 = vst.msk [vmem:[#allocation2 + $0xe8] sm:$0xf] %vm584_vm10, %v572_v38 }
 0x459   :  { %583 = vst.msk [vmem:[#allocation2 + $0xe0] sm:$0xff] %vm1989_vm11, %v575_v40 }
 0x45c   :  { %v1206_v44 = vpop.permute.xlu0 %1205 }
 0x45d   :  { %v1208_v46 = vrot.slane %v1206_v44, 4 }
 0x45e   :  { %v622_v48 = vld [vmem:[#allocation2 + $0xf4] sm:$0xff]  ;;  %v1204_v47 = vpop.permute.xlu1 %1203 }
 0x45f   :  { %v1210_v49 = vsel %vm574_vm9, %v1208_v46, %v1206_v44  ;;  %1218 = vst.msk [vmem:[#allocation2 + $0xf8] sm:$0xf] %vm584_vm10, %v1208_v46  ;;  %v1207_v28 = vrot.slane %v1204_v47, 4 }
 0x460   :  { %1217 = vst.msk [vmem:[#allocation2 + $0xf0] sm:$0xff] %vm1989_vm11, %v1210_v49  ;;  %v621_v50 = vld [vmem:[#allocation2 + $0xe4] sm:$0xff]  ;;  %v459_v52 = vpop.permute.xlu0 %458 }
 0x461   :  { %v1209_v54 = vsel %vm574_vm9, %v1207_v28, %v1204_v47  ;;  %1216 = vst.msk [vmem:[#allocation2 + $0xe8] sm:$0xf] %vm584_vm10, %v1207_v28  ;;  %v461_v58 = vrot.slane %v459_v52, 4  ;;  %v1434_v59 = vcombine.high %v621_v50, %v622_v48  ;;  %v1433_v35 = vcombine.low %v621_v50, %v622_v48 }
 0x462   :  { %1215 = vst.msk [vmem:[#allocation2 + $0xe0] sm:$0xff] %vm1989_vm11, %v1209_v54  ;;  %v457_v36 = vpop.permute.xlu1 %456  ;;  %vm510_vm9 = vcmask 7168   ;;  %vm497_vm11 = vcmask 1043576  }
 0x463   :  { %v464_v62 = vsel %vm119_vm0, %v461_v58, %v459_v52  ;;  %v460_v63 = vrot.slane %v457_v36, 4  ;;  %737 = vmatprep.subr.bf16.mxu0 %v1434_v59 }
 0x464   :  { %474 = vst.msk [vmem:[#allocation2 + $0x34] sm:$0xff] %vm2008_vm13, %v464_v62  ;;  %v1114_v0 = vpop.permute.xlu0 %1113  ;;  %738 = vmatpush1.bf16.msra.mxu0 %v1433_v35 }
 0x465   :  { %v463_v1 = vsel %vm119_vm0, %v460_v63, %v457_v36  ;;  %v1116_v2 = vrot.slane %v1114_v0, 4 }
 0x466   :  { %471 = vst.msk [vmem:[#allocation2 + $0x24] sm:$0xff] %vm2008_vm13, %v463_v1  ;;  %v1112_v3 = vpop.permute.xlu1 %1111 }
 0x467   :  { %v1115_v41 = vrot.slane %v1112_v3, 4  ;;  %v1118_v10 = vsel %vm119_vm0, %v1116_v2, %v1114_v0 }
 0x468   :  { %v551_v42 = vpop.permute.xlu0 %550  ;;  %v1556_v7 = vld [vmem:[#allocation2 + $0xe8] ss:$16 sps:$4 sm:$0xff]  }
 0x469   :  { %v553_v5 = vrot.slane %v551_v42, 4  ;;  %v1554_v6 = vld [vmem:[#allocation2 + $0xe4] ss:$16 sps:$4 sm:$0xff]   ;;  %1343 = vmatprep.subr.bf16.mxu1 %v1556_v7  ;;  %v1117_v16 = vsel %vm119_vm0, %v1115_v41, %v1112_v3  ;;  %vm517_vm0 = vcmask 1043464  }
 0x46a   :  { %v549_v8 = vpop.permute.xlu1 %548  ;;  %1344 = vmatpush1.bf16.msra.mxu1 %v1554_v6  ;;  %vm2063_vm10 = vmor %vm442_vm7, %vm517_vm0 }
 0x46b   :  { %v2025_v9 = vld [vmem:[#allocation2 + $0x34] sm:$0xff]  ;;  %v556_v11 = vsel %vm554_vm15, %v553_v5, %v551_v42  ;;  %567 = vst.msk [vmem:[#allocation2 + $0xd8] sm:$0xf] %vm564_vm3, %v553_v5  ;;  %v552_v12 = vrot.slane %v549_v8, 4 }
 0x46c   :  { %1125 = vst.msk [vmem:[#allocation2 + $0x34] sm:$0xff] %vm2008_vm13, %v1118_v10  ;;  %v531_v14 = vpop.permute.xlu0 %530 }
 0x46d   :  { %566 = vst.msk [vmem:[#allocation2 + $0xd0] sm:$0xff] %vm2021_vm1, %v556_v11  ;;  %v2034_v15 = vld [vmem:[#allocation2 + $0x24] sm:$0xff]  ;;  %v555_v17 = vsel %vm554_vm15, %v552_v12, %v549_v8  ;;  %v533_v19 = vrot.slane %v531_v14, 4 }
 0x46e   :  { %565 = vst.msk [vmem:[#allocation2 + $0xc8] sm:$0xf] %vm564_vm3, %v552_v12  ;;  %v529_v20 = vpop.permute.xlu1 %528  ;;  %v1422_v57 = vcombine.high %v2034_v15, %v2025_v9  ;;  %v1421_v56 = vcombine.low %v2034_v15, %v2025_v9 }
 0x46f   :  { %1123 = vst.msk [vmem:[#allocation2 + $0x24] sm:$0xff] %vm2008_vm13, %v1117_v16  ;;  %v536_v21 = vsel %vm534_vm5, %v533_v19, %v531_v14  ;;  %v532_v22 = vrot.slane %v529_v20, 4  ;;  %vm2081_vm13 = vmor %vm442_vm7, %vm497_vm11 }
 0x470   :  { %563 = vst.msk [vmem:[#allocation2 + $0xc0] sm:$0xff] %vm2021_vm1, %v555_v17  ;;  %v1190_v23 = vpop.permute.xlu0 %1189 }
 0x471   :  { %547 = vst.msk [vmem:[#allocation2 + $0xb8] sm:$0xf] %vm544_vm6, %v533_v19  ;;  %v535_v26 = vsel %vm534_vm5, %v532_v22, %v529_v20  ;;  %545 = vst.msk [vmem:[#allocation2 + $0xa8] sm:$0xf] %vm544_vm6, %v532_v22  ;;  %v1192_v29 = vrot.slane %v1190_v23, 4 }
 0x472   :  { %546 = vst.msk [vmem:[#allocation2 + $0xb0] sm:$0xff] %vm2041_vm8, %v536_v21  ;;  %543 = vst.msk [vmem:[#allocation2 + $0xa0] sm:$0xff] %vm2041_vm8, %v535_v26  ;;  %v1188_v30 = vpop.permute.xlu1 %1187 }
 0x473   :  { %v1194_v32 = vsel %vm554_vm15, %v1192_v29, %v1190_v23  ;;  %v1191_v33 = vrot.slane %v1188_v30, 4 }
 0x474   :  { %v620_v31 = vld [vmem:[#allocation2 + $0xd4] sm:$0xff]  ;;  %v507_v34 = vpop.permute.xlu0 %506 }
 0x475   :  { %1201 = vst.msk [vmem:[#allocation2 + $0xd0] sm:$0xff] %vm2021_vm1, %v1194_v32  ;;  %v1193_v37 = vsel %vm554_vm15, %v1191_v33, %v1188_v30  ;;  %v509_v40 = vrot.slane %v507_v34, 4  ;;  %vm434_vm15 = vcmask 138240  }
 0x476   :  { %1202 = vst.msk [vmem:[#allocation2 + $0xd8] sm:$0xf] %vm564_vm3, %v1192_v29  ;;  %v505_v44 = vpop.permute.xlu1 %504 }
 0x477   :  { %v619_v13 = vld [vmem:[#allocation2 + $0xc4] sm:$0xff]  ;;  %v512_v47 = vsel %vm510_vm9, %v509_v40, %v507_v34  ;;  %v508_v49 = vrot.slane %v505_v44, 4 }
 0x478   :  { %1199 = vst.msk [vmem:[#allocation2 + $0xc0] sm:$0xff] %vm2021_vm1, %v1193_v37  ;;  %v1432_v46 = vcombine.high %v619_v13, %v620_v31  ;;  %v1431_v48 = vcombine.low %v619_v13, %v620_v31  ;;  %v1174_v28 = vpop.permute.xlu0 %1173  ;;  %vm2105_vm1 = vmor %vm442_vm7, %vm441_vm14 }
 0x479   :  { %1200 = vst.msk [vmem:[#allocation2 + $0xc8] sm:$0xf] %vm564_vm3, %v1191_v33  ;;  %v511_v50 = vsel %vm510_vm9, %v508_v49, %v505_v44  ;;  %v618_v52 = vld [vmem:[#allocation2 + $0xb4] sm:$0xff]  ;;  %v1176_v54 = vrot.slane %v1174_v28, 4  ;;  %v617_v55 = vld [vmem:[#allocation2 + $0xa4] sm:$0xff]  ;;  %vm594_vm3 = vcmask 908288  }
 0x47a   :  { %522 = vst.msk [vmem:[#allocation2 + $0x74] sm:$0xff] %vm2063_vm10, %v512_v47  ;;  %739 = vmatprep.subr.bf16.mxu0 %v1432_v46  ;;  %519 = vst.msk [vmem:[#allocation2 + $0x64] sm:$0xff] %vm2063_vm10, %v511_v50  ;;  %v1172_v58 = vpop.permute.xlu1 %1171  ;;  %v1430_v59 = vcombine.high %v617_v55, %v618_v52  ;;  %v1429_v35 = vcombine.low %v617_v55, %v618_v52 }
 0x47b   :  { %740 = vmatpush1.bf16.msra.mxu0 %v1431_v48  ;;  %v1178_v36 = vsel %vm534_vm5, %v1176_v54, %v1174_v28  ;;  %1186 = vst.msk [vmem:[#allocation2 + $0xb8] sm:$0xf] %vm544_vm6, %v1176_v54  ;;  %v1175_v62 = vrot.slane %v1172_v58, 4 }
 0x47c   :  { %1185 = vst.msk [vmem:[#allocation2 + $0xb0] sm:$0xff] %vm2041_vm8, %v1178_v36  ;;  %v487_v0 = vpop.permute.xlu0 %486  ;;  %741 = vmatprep.subr.bf16.mxu0 %v1430_v59 }
 0x47d   :  { %v1177_v1 = vsel %vm534_vm5, %v1175_v62, %v1172_v58  ;;  %1184 = vst.msk [vmem:[#allocation2 + $0xa8] sm:$0xf] %vm544_vm6, %v1175_v62  ;;  %v489_v2 = vrot.slane %v487_v0, 4  ;;  %vm603_vm5 = vcmask 904192  }
 0x47e   :  { %1183 = vst.msk [vmem:[#allocation2 + $0xa0] sm:$0xff] %vm2041_vm8, %v1177_v1  ;;  %v485_v4 = vpop.permute.xlu1 %484 }
 0x47f   :  { %742 = vmatpush1.bf16.msra.mxu0 %v1429_v35  ;;  %v1557_v3 = vld [vmem:[#allocation2 + $0xc4] ss:$16 sps:$4 sm:$0xff]   ;;  %v492_v42 = vsel %vm490_vm12, %v489_v2, %v487_v0  ;;  %v488_v5 = vrot.slane %v485_v4, 4 }
 0x480   :  { %v1559_v41 = vld [vmem:[#allocation2 + $0xc8] ss:$16 sps:$4 sm:$0xff]   ;;  %743 = vmatprep.subr.bf16.mxu0 %v1621_v25  ;;  %502 = vst.msk [vmem:[#allocation2 + $0x54] sm:$0xff] %vm2081_vm13, %v492_v42  ;;  %v1154_v6 = vpop.permute.xlu0 %1153  ;;  %v1569_v42 = vld [vmem:[#allocation2 + $0x24] ss:$16 sps:$4 sm:$0xff]  }
 0x481   :  { %1345 = vmatprep.subr.bf16.mxu1 %v1559_v41  ;;  %v491_v7 = vsel %vm490_vm12, %v488_v5, %v485_v4  ;;  %v614_v8 = vld [vmem:[#allocation2 + $0x74] sm:$0xff]  ;;  %v1156_v10 = vrot.slane %v1154_v6, 4  ;;  %v613_v43 = vld [vmem:[#allocation2 + $0x64] sm:$0xff] }
 0x482   :  { %1346 = vmatpush1.bf16.msra.mxu1 %v1557_v3  ;;  %499 = vst.msk [vmem:[#allocation2 + $0x44] sm:$0xff] %vm2081_vm13, %v491_v7  ;;  %v1152_v24 = vpop.permute.xlu1 %1151  ;;  %v1426_v25 = vcombine.high %v613_v43, %v614_v8  ;;  %v1425_v11 = vcombine.low %v613_v43, %v614_v8  ;;  %v1571_v3 = vld [vmem:[#allocation2 + $0x28] ss:$16 sps:$4 sm:$0xff]  }
 0x483   :  { %744 = vmatpush1.bf16.msra.mxu0 %v1622_v27  ;;  %v1158_v12 = vsel %vm510_vm9, %v1156_v10, %v1154_v6  ;;  %v1155_v14 = vrot.slane %v1152_v24, 4  ;;  %v1574_v7 = vld [vmem:[%s2219_s6] ss:$8 sps:$4 sm:$0xff]  }
 0x484   :  { %1165 = vst.msk [vmem:[#allocation2 + $0x74] sm:$0xff] %vm2063_vm10, %v1158_v12  ;;  %v431_v39 = vpop.permute.xlu0 %430  ;;  %745 = vmatprep.subr.bf16.mxu0 %v1426_v25  ;;  %v1562_v18 = vld [vmem:[#allocation2 + $0xa8] ss:$16 sps:$4 sm:$0xff]   ;;  %v780_v12 = vld [vmem:[%s2213_s0] sm:$0xff] }
 0x485   :  { %v1157_v45 = vsel %vm510_vm9, %v1155_v14, %v1152_v24  ;;  %v433_v27 = vrot.slane %v431_v39, 4  ;;  %v1560_v17 = vld [vmem:[#allocation2 + $0xa4] ss:$16 sps:$4 sm:$0xff]   ;;  %1347 = vmatprep.subr.bf16.mxu1 %v1562_v18 }
 0x486   :  { %1163 = vst.msk [vmem:[#allocation2 + $0x64] sm:$0xff] %vm2063_vm10, %v1157_v45  ;;  %v429_v19 = vpop.permute.xlu1 %428  ;;  %1348 = vmatpush1.bf16.msra.mxu1 %v1560_v17 }
 0x487   :  { %746 = vmatpush1.bf16.msra.mxu0 %v1425_v11  ;;  %v436_v20 = vsel %vm434_vm15, %v433_v27, %v431_v39  ;;  %v432_v21 = vrot.slane %v429_v19, 4  ;;  %v612_v26 = vld [vmem:[#allocation2 + $0x54] sm:$0xff]  ;;  %1349 = vmatprep.subr.bf16.mxu1 %v1624_v61  ;;  %v781_v39 = vld [vmem:[%s2213_s0 + $0x8] sm:$0xff] }
 0x488   :  { %446 = vst.msk [vmem:[#allocation2 + $0x14] sm:$0xff] %vm2105_vm1, %v436_v20  ;;  %v1138_v22 = vpop.permute.xlu0 %1137 }
 0x489   :  { %v435_v23 = vsel %vm434_vm15, %v432_v21, %v429_v19  ;;  %v1140_v29 = vrot.slane %v1138_v22, 4  ;;  %v611_v30 = vld [vmem:[#allocation2 + $0x44] sm:$0xff]  ;;  %v782_v19 = vld [vmem:[%s2213_s0 + $0x10] sm:$0xff] }
 0x48a   :  { %444 = vst.msk [vmem:[#allocation2 + $0x4] sm:$0xff] %vm2105_vm1, %v435_v23  ;;  %v1136_v31 = vpop.permute.xlu1 %1135  ;;  %v1424_v32 = vcombine.high %v611_v30, %v612_v26  ;;  %v1423_v33 = vcombine.low %v611_v30, %v612_v26  ;;  %1350 = vmatpush1.bf16.msra.mxu1 %v1623_v60  ;;  %v783_v23 = vld [vmem:[%s2213_s0 + $0x18] sm:$0xff] }
 0x48b   :  { %v1142_v34 = vsel %vm490_vm12, %v1140_v29, %v1138_v22  ;;  %v1139_v13 = vrot.slane %v1136_v31, 4 }
 0x48c   :  { %1149 = vst.msk [vmem:[#allocation2 + $0x54] sm:$0xff] %vm2081_vm13, %v1142_v34  ;;  %v591_v53 = vpop.permute.xlu0 %590  ;;  %747 = vmatprep.subr.bf16.mxu0 %v1424_v32 }
 0x48d   :  { %v1141_v61 = vsel %vm490_vm12, %v1139_v13, %v1136_v31  ;;  %v593_v38 = vrot.slane %v591_v53, 4  ;;  %748 = vmatpush1.bf16.msra.mxu0 %v1423_v33  ;;  %v1563_v40 = vld [vmem:[#allocation2 + $0x64] ss:$16 sps:$4 sm:$0xff]   ;;  %v1565_v44 = vld [vmem:[#allocation2 + $0x68] ss:$16 sps:$4 sm:$0xff]  }
 0x48e   :  { %1147 = vst.msk [vmem:[#allocation2 + $0x44] sm:$0xff] %vm2081_vm13, %v1141_v61  ;;  %749 = vmatprep.subr.bf16.mxu0 %v1422_v57  ;;  %v589_v46 = vpop.permute.xlu1 %588  ;;  %1351 = vmatprep.subr.bf16.mxu1 %v1565_v44  ;;  %v1479_v31 = vld [vmem:[%s2213_s0 + $0x20] sm:$0xff]  ;;  %v1480_v13 = vld [vmem:[%s2213_s0 + $0x28] sm:$0xff]  ;;  %v1481_v61 = vld [vmem:[%s2213_s0 + $0x30] sm:$0xff] }
 0x48f   :  { %v596_v48 = vsel %vm594_vm3, %v593_v38, %v591_v53  ;;  %606 = vst.msk [vmem:[#allocation2 + $0x118] sm:$0xf] %vm603_vm5, %v593_v38  ;;  %v592_v51 = vrot.slane %v589_v46, 4  ;;  %1352 = vmatpush1.bf16.msra.mxu1 %v1563_v40  ;;  %v608_v49 = vld [vmem:[#allocation2 + $0x14] sm:$0xff] }
 0x490   :  { %605 = vst.msk [vmem:[#allocation2 + $0x110] sm:$0xff] %vm2126_vm4, %v596_v48  ;;  %v1090_v60 = vpop.permute.xlu0 %1089 }
 0x491   :  { %v595_v47 = vsel %vm594_vm3, %v592_v51, %v589_v46  ;;  %604 = vst.msk [vmem:[#allocation2 + $0x108] sm:$0xf] %vm603_vm5, %v592_v51  ;;  %v1092_v28 = vrot.slane %v1090_v60, 4  ;;  %750 = vmatpush1.bf16.msra.mxu0 %v1421_v56  ;;  %v607_v50 = vld [vmem:[#allocation2 + $0x4] sm:$0xff]  ;;  %v1482_v46 = vld [vmem:[%s2213_s0 + $0x38] sm:$0xff] }
 0x492   :  { %602 = vst.msk [vmem:[#allocation2 + $0x100] sm:$0xff] %vm2126_vm4, %v595_v47  ;;  %v1088_v52 = vpop.permute.xlu1 %1087  ;;  %v1420_v54 = vcombine.high %v607_v50, %v608_v49  ;;  %v1419_v55 = vcombine.low %v607_v50, %v608_v49 }
 0x493   :  { %v1094_v9 = vsel %vm434_vm15, %v1092_v28, %v1090_v60  ;;  %v1091_v15 = vrot.slane %v1088_v52, 4 }
 0x494   :  { %1101 = vst.msk [vmem:[#allocation2 + $0x14] sm:$0xff] %vm2105_vm1, %v1094_v9  ;;  %v1222_v58 = vpop.permute.xlu0 %1221  ;;  %751 = vmatprep.subr.bf16.mxu0 %v1420_v54 }
 0x495   :  { %v1093_v59 = vsel %vm434_vm15, %v1091_v15, %v1088_v52  ;;  %v1224_v35 = vrot.slane %v1222_v58, 4  ;;  %752 = vmatpush1.bf16.msra.mxu0 %v1419_v55  ;;  %v1566_v36 = vld [vmem:[#allocation2 + $0x44] ss:$16 sps:$4 sm:$0xff]   ;;  %v1568_v62 = vld [vmem:[#allocation2 + $0x48] ss:$16 sps:$4 sm:$0xff]  }
 0x496   :  { %1099 = vst.msk [vmem:[#allocation2 + $0x4] sm:$0xff] %vm2105_vm1, %v1093_v59  ;;  %v1220_v63 = vpop.permute.xlu1 %1219  ;;  %1353 = vmatprep.subr.bf16.mxu1 %v1568_v62 }
 0x497   :  { %v624_v0 = vld [vmem:[#allocation2 + $0x114] sm:$0xff]  ;;  %v1226_v1 = vsel %vm594_vm3, %v1224_v35, %v1222_v58  ;;  %v1223_v2 = vrot.slane %v1220_v63, 4  ;;  %1354 = vmatpush1.bf16.msra.mxu1 %v1566_v36 }
 0x498   :  { %1233 = vst.msk [vmem:[#allocation2 + $0x110] sm:$0xff] %vm2126_vm4, %v1226_v1  ;;  %1355 = vmatprep.subr.bf16.mxu1 %v1571_v3 }
 0x499   :  { %1234 = vst.msk [vmem:[#allocation2 + $0x118] sm:$0xf] %vm603_vm5, %v1224_v35  ;;  %v623_v41 = vld [vmem:[#allocation2 + $0x104] sm:$0xff]  ;;  %v1225_v4 = vsel %vm594_vm3, %v1223_v2, %v1220_v63 }
 0x49a   :  { %1231 = vst.msk [vmem:[#allocation2 + $0x100] sm:$0xff] %vm2126_vm4, %v1225_v4  ;;  %v1436_v5 = vcombine.high %v623_v41, %v624_v0  ;;  %v1435_v6 = vcombine.low %v623_v41, %v624_v0 }
 0x49b   :  { %1232 = vst.msk [vmem:[#allocation2 + $0x108] sm:$0xf] %vm603_vm5, %v1223_v2  ;;  %1356 = vmatpush1.bf16.msra.mxu1 %v1569_v42 }
 0x49c   :  { %767 = vmatprep.subr.bf16.mxu0 %v1436_v5 }
 0x49d   :  { %768 = vmatpush2.bf16.msra.mxu0 %v1435_v6  ;;  %v1575_v8 = vld [vmem:[#allocation2 + $0x4] ss:$16 sps:$4 sm:$0xff]   ;;  %v1577_v10 = vld [vmem:[#allocation2 + $0x8] ss:$16 sps:$4 sm:$0xff]  }
 0x49e   :  { %1357 = vmatprep.subr.bf16.mxu1 %v1577_v10 }
 0x49f   :  { %1358 = vmatpush1.bf16.msra.mxu1 %v1575_v8 }
 0x4a0   :  { %770 = vmatmul.mubr.bf16.vlgmr.msra.gmra.mxu0 %v1574_v7 }
 0x4a1   :  { %v1578_v43 = vld [vmem:[#allocation2 + $0x104] ss:$16 sps:$4 sm:$0xff]   ;;  %v633_v17 = vpop.permute.xlu0 %632 }
 0x4a2   :  { %v1580_v24 = vld [vmem:[#allocation2 + $0x108] ss:$16 sps:$4 sm:$0xff]  }
 0x4a3   :  { %1373 = vmatprep.subr.bf16.mxu1 %v1580_v24  ;;  %v628_v25 = vpop.permute.xlu1 %627 }
 0x4a4   :  { %1374 = vmatpush2.bf16.msra.mxu1 %v1578_v43 }
 0x4a7   :  { %1376 = vmatmul.mubr.bf16.vlgmr.msra.gmra.mxu1 %v1574_v7 }
 0x560   :  { %v771_v11 = vpop.f32.mrf.mxu0 }
 0x561   :  { %v772_v14 = vadd.f32 %v771_v11, %v628_v25 }
 0x562   :  { %v773_v16 = vpop.f32.mrf.mxu0 }
 0x563   :  { %v784_v45 = vadd.f32 %v780_v12, %v772_v14  ;;  %v774_v27 = vadd.f32 %v773_v16, %v628_v25 }
 0x564   :  { %v775_v18 = vpop.f32.mrf.mxu0 }
 0x565   :  { %788 = vst [vmem:[%s2221_s8] sm:$0xff] %v784_v45  ;;  %v785_v20 = vadd.f32 %v781_v39, %v774_v27  ;;  %v776_v21 = vadd.f32 %v775_v18, %v633_v17 }
 0x566   :  { %v777_v22 = vpop.f32.mrf.mxu0 }
 0x567   :  { %789 = vst [vmem:[%s2221_s8 + $0x8] sm:$0xff] %v785_v20  ;;  %v786_v26 = vadd.f32 %v782_v19, %v776_v21  ;;  %v778_v29 = vadd.f32 %v777_v22, %v633_v17  ;;  %v1377_v30 = vpop.f32.mrf.mxu1 }
 0x568   :  { %v1378_v32 = vadd.f32 %v1377_v30, %v628_v25 }
 0x569   :  { %790 = vst [vmem:[%s2221_s8 + $0x10] sm:$0xff] %v786_v26  ;;  %v787_v33 = vadd.f32 %v783_v23, %v778_v29  ;;  %v1379_v34 = vpop.f32.mrf.mxu1 }
 0x56a   :  { %v1390_v37 = vadd.f32 %v1479_v31, %v1378_v32  ;;  %v1380_v53 = vadd.f32 %v1379_v34, %v628_v25 }
 0x56b   :  { %791 = vst [vmem:[%s2221_s8 + $0x18] sm:$0xff] %v787_v33  ;;  %v1381_v57 = vpop.f32.mrf.mxu1 }
 0x56c   :  { %1483 = vst [vmem:[%s2221_s8 + $0x20] sm:$0xff] %v1390_v37  ;;  %v1391_v38 = vadd.f32 %v1480_v13, %v1380_v53  ;;  %v1382_v40 = vadd.f32 %v1381_v57, %v633_v17 }
 0x56d   :  { %v1383_v44 = vpop.f32.mrf.mxu1 }
 0x56e   :  { %1484 = vst [vmem:[%s2221_s8 + $0x28] sm:$0xff] %v1391_v38  ;;  %v1392_v48 = vadd.f32 %v1481_v61, %v1382_v40  ;;  %v1384_v51 = vadd.f32 %v1383_v44, %v633_v17 }
 0x570   :  { %1485 = vst [vmem:[%s2221_s8 + $0x30] sm:$0xff] %v1392_v48  ;;  %v1393_v56 = vadd.f32 %v1482_v46, %v1384_v51 }
 0x572   :  { %1486 = vst [vmem:[%s2221_s8 + $0x38] sm:$0xff] %v1393_v56 }

</bundles_post_ra>
